<compile_context>
chip_gen: v7x
topology: tpu7x:2x2x1
jax: 0.10.0
libtpu: 0.0.40
codegen_flags: <defaults>
</compile_context>

<pallas_src>
import math
import functools

import jax
import jax.numpy as jnp
from jax import lax
from jax.experimental import pallas as pl
from jax.experimental.pallas import tpu as pltpu


def _round_up(n, m):
    return ((n + m - 1) // m) * m


def _arc_margin_kernel(x_ref, wt_ref, inv_xn_s_ref, inv_wn_ref, label_ref,
                       out_ref, *, s, cos_m, sin_m, th, mm, easy_margin,
                       tile_c, mxu_precision):
    """One (TB, TC) output tile of the ArcFace forward.

    x_ref:        (TB, D)  VMEM  (f32 or bf16)
    wt_ref:       (D, TC)  VMEM  (f32 or bf16), weight pre-transposed
    inv_xn_s_ref: (TB, 1)  f32   VMEM   s / max(||x_b||, eps)
    inv_wn_ref:   (1, TC)  f32   VMEM   1 / max(||w_c||, eps)
    label_ref:    (TB, 1)  i32   VMEM
    out_ref:      (TB, TC) f32   VMEM
    """
    # MXU: (TB, D) x (D, TC) contraction, f32 accumulation, no transpose.
    raw = lax.dot_general(x_ref[...], wt_ref[...],
                          (((1,), (0,)), ((), ())),
                          preferred_element_type=jnp.float32,
                          precision=mxu_precision)                 # (TB, TC)

    # Both normalizations and the '* s' scale folded into the epilogue.
    cos_s = raw * inv_xn_s_ref[...] * inv_wn_ref[...]              # s * cosine

    # One-hot as a compare against a (1, TC) lane iota offset by this tile's
    # column origin; broadcasts against the (TB, 1) labels.
    col0 = pl.program_id(0) * tile_c
    class_ids = col0 + lax.broadcasted_iota(jnp.int32, (1, tile_c), 1)
    is_target = class_ids == label_ref[...]                        # (TB, TC)

    # Margin math only on the target column: masked lane reduce -> (TB, 1).
    tgt_cos = jnp.sum(jnp.where(is_target, cos_s, 0.0), axis=1,
                      keepdims=True) * (1.0 / s)                   # (TB, 1)
    sine = jnp.sqrt(jnp.maximum(1.0 - tgt_cos * tgt_cos, 0.0))
    phi = tgt_cos * cos_m - sine * sin_m
    if easy_margin:
        phi = jnp.where(tgt_cos > 0.0, phi, tgt_cos)
    else:
        phi = jnp.where(tgt_cos > th, phi, tgt_cos - mm)

    out_ref[...] = jnp.where(is_target, phi * s, cos_s)


def arc_margin_product(x, weight, label, *, s=30.0, m=0.5, easy_margin=False,
                       tile_b=128, tile_c=512, use_bf16_matmul=False):
    """ArcFace forward. x: (B, D), weight: (C, D), label: (B,) int -> (B, C) f32.

    Tile guidance: tb multiple of 8, tc multiple of 128 (lane-dense stores).
    Defaults are conservative for v5e's 16 MiB scoped VMEM; on v6e (32 MiB
    scoped / 128 MiB phys) tc=1024-2048 and tb=256 amortize grid overhead; on
    v7x re-derive against 64 MiB physical VMEM.
    """
    B, D = x.shape
    C, D2 = weight.shape
    assert D == D2

    tb = min(tile_b, _round_up(B, 8))
    tc = min(tile_c, _round_up(C, 128))
    B_pad = _round_up(B, tb)
    C_pad = _round_up(C, tc)

    x_f32 = x.astype(jnp.float32)
    w_f32 = weight.astype(jnp.float32)

    # Per-row / per-class inverse norms computed once in XLA (O(B*D) + O(C*D)).
    # s is folded into the row scale so the kernel's trailing '* s' disappears.
    inv_xn_s = s * lax.rsqrt(jnp.maximum(jnp.sum(x_f32 * x_f32, axis=-1),
                                         1e-24))                     # (B,)
    inv_wn = lax.rsqrt(jnp.maximum(jnp.sum(w_f32 * w_f32, axis=-1),
                                   1e-24))                           # (C,)

    mxu_dtype = jnp.bfloat16 if use_bf16_matmul else jnp.float32
    mxu_precision = (lax.Precision.DEFAULT if use_bf16_matmul
                     else lax.Precision.HIGHEST)

    # (D, C) weight layout: lane-dense DMA, standard MXU contraction.
    w_t = jnp.pad(w_f32.T.astype(mxu_dtype), ((0, 0), (0, C_pad - C)))
    x_p = jnp.pad(x_f32.astype(mxu_dtype), ((0, B_pad - B), (0, 0)))
    inv_xn_s_p = jnp.pad(inv_xn_s.reshape(B, 1), ((0, B_pad - B), (0, 0)))
    inv_wn_p = jnp.pad(inv_wn.reshape(1, C), ((0, 0), (0, C_pad - C)))
    label_p = jnp.pad(jnp.asarray(label, jnp.int32).reshape(B, 1),
                      ((0, B_pad - B), (0, 0)))

    kernel = functools.partial(
        _arc_margin_kernel,
        s=float(s),
        cos_m=math.cos(m),
        sin_m=math.sin(m),
        th=math.cos(math.pi - m),
        mm=math.sin(math.pi - m) * m,
        easy_margin=easy_margin,
        tile_c=tc,
        mxu_precision=mxu_precision,
    )

    # Class-tile axis OUTERMOST: the weight block index is constant across all
    # inner batch steps, so the (D, tc) weight tile is DMA'd once per class
    # tile instead of once per (class, batch) pair.
    grid = (C_pad // tc, B_pad // tb)
    out_p = pl.pallas_call(
        kernel,
        out_shape=jax.ShapeDtypeStruct((B_pad, C_pad), jnp.float32),
        grid_spec=pltpu.PrefetchScalarGridSpec(
            num_scalar_prefetch=0,
            grid=grid,
            in_specs=[
                pl.BlockSpec((tb, D), lambda j, i: (i, 0)),   # x tile
                pl.BlockSpec((D, tc), lambda j, i: (0, j)),   # weight.T tile
                pl.BlockSpec((tb, 1), lambda j, i: (i, 0)),   # s / ||x_row||
                pl.BlockSpec((1, tc), lambda j, i: (0, j)),   # 1 / ||w_col||
                pl.BlockSpec((tb, 1), lambda j, i: (i, 0)),   # labels
            ],
            out_specs=pl.BlockSpec((tb, tc), lambda j, i: (i, j)),
        ),
        compiler_params=pltpu.CompilerParams(
            dimension_semantics=("parallel", "parallel")),
    )(x_p, w_t, inv_xn_s_p, inv_wn_p, label_p)

    return out_p[:B, :C]


def _reference(x, weight, label, *, s=30.0, m=0.5, easy_margin=False):
    eps = 1e-12
    x_n = x / jnp.maximum(jnp.linalg.norm(x, axis=-1, keepdims=True), eps)
    w_n = weight / jnp.maximum(jnp.linalg.norm(weight, axis=-1, keepdims=True),
                               eps)
    cosine = jnp.dot(x_n, w_n.T, precision=lax.Precision.HIGHEST)
    sine = jnp.sqrt(jnp.clip(1.0 - cosine ** 2, 0.0, 1.0))
    phi = cosine * math.cos(m) - sine * math.sin(m)
    if easy_margin:
        phi = jnp.where(cosine > 0, phi, cosine)
    else:
        phi = jnp.where(cosine > math.cos(math.pi - m),
                        phi, cosine - math.sin(math.pi - m) * m)
    one_hot = jax.nn.one_hot(label, weight.shape[0], dtype=cosine.dtype)
    return (one_hot * phi + (1.0 - one_hot) * cosine) * s


if __name__ == "__main__":
    key = jax.random.PRNGKey(0)

    # Case 1: exercises row padding (B=10 -> 16) and a multi-tile class grid
    # (C=640 -> 1024 with tc=512, grid (2, 1)), easy_margin=False.
    B1, D1, C1 = 10, 128, 640
    k1, k2, k3, key = jax.random.split(key, 4)
    x1 = jax.random.normal(k1, (B1, D1), dtype=jnp.float32)
    bound1 = math.sqrt(6.0 / (D1 + C1))
    w1 = jax.random.uniform(k2, (C1, D1), dtype=jnp.float32,
                            minval=-bound1, maxval=bound1)
    l1 = jax.random.randint(k3, (B1,), 0, C1, dtype=jnp.int32)

    out1 = jax.block_until_ready(
        arc_margin_product(x1, w1, l1, s=30.0, m=0.5, easy_margin=False))
    ref1 = _reference(x1, w1, l1, s=30.0, m=0.5, easy_margin=False)
    assert out1.shape == (B1, C1)
    assert jnp.allclose(out1, ref1, atol=2e-4, rtol=2e-4), "mismatch (case 1)"

    # Case 2: small square shapes matching the original demo, easy_margin=True.
    B2, D2, C2 = 8, 128, 128
    k1, k2, k3, key = jax.random.split(key, 4)
    x2 = jax.random.normal(k1, (B2, D2), dtype=jnp.float32)
    bound2 = math.sqrt(6.0 / (D2 + C2))
    w2 = jax.random.uniform(k2, (C2, D2), dtype=jnp.float32,
                            minval=-bound2, maxval=bound2)
    l2 = jax.random.randint(k3, (B2,), 0, C2, dtype=jnp.int32)

    out2 = jax.block_until_ready(
        arc_margin_product(x2, w2, l2, s=30.0, m=0.5, easy_margin=True))
    ref2 = _reference(x2, w2, l2, s=30.0, m=0.5, easy_margin=True)
    assert out2.shape == (B2, C2)
    assert jnp.allclose(out2, ref2, atol=2e-4, rtol=2e-4), "mismatch (case 2)"

    print("KERNEL_OK")
</pallas_src>

<mosaic_0001>
module attributes {stable_mosaic.version = 11 : i64} {
  func.func @_arc_margin_kernel(%arg0: i32, %arg1: i32, %arg2: memref<16x128xf32, #tpu.memory_space<vmem>>, %arg3: memref<128x512xf32, #tpu.memory_space<vmem>>, %arg4: memref<16x1xf32, #tpu.memory_space<vmem>>, %arg5: memref<1x512xf32, #tpu.memory_space<vmem>>, %arg6: memref<16x1xi32, #tpu.memory_space<vmem>>, %arg7: memref<16x512xf32, #tpu.memory_space<vmem>>) attributes {dimension_semantics = [#tpu.dimension_semantics<parallel>, #tpu.dimension_semantics<parallel>], iteration_bounds = array<i64: 2, 1>, scalar_prefetch = 0 : i64, scratch_operands = 0 : i64, tpu.core_type = #tpu.core_type<tc>, window_params = [{transform_indices = @transform_0, window_bounds = array<i64: 16, 128>}, {transform_indices = @transform_1, window_bounds = array<i64: 128, 512>}, {transform_indices = @transform_2, window_bounds = array<i64: 16, 1>}, {transform_indices = @transform_3, window_bounds = array<i64: 1, 512>}, {transform_indices = @transform_4, window_bounds = array<i64: 16, 1>}, {transform_indices = @transform_5, window_bounds = array<i64: 16, 512>}]} {
    %c0 = arith.constant 0 : index
    %c0_0 = arith.constant 0 : index
    %0 = vector.load %arg2[%c0, %c0_0] : memref<16x128xf32, #tpu.memory_space<vmem>>, vector<16x128xf32>
    %c0_1 = arith.constant 0 : index
    %c0_2 = arith.constant 0 : index
    %1 = vector.load %arg3[%c0_1, %c0_2] : memref<128x512xf32, #tpu.memory_space<vmem>>, vector<128x512xf32>
    %cst = arith.constant dense<0.000000e+00> : vector<16x512xf32>
    %2 = tpu.matmul %0, %1, %cst {dimension_numbers = #tpu.dot_dimension_numbers<[1], [0], [0], [1], [0, 0, 1, 1], [], []>, precision = #tpu.contract_precision<fp32>} : vector<16x128xf32>, vector<128x512xf32>, vector<16x512xf32> -> vector<16x512xf32>
    %c0_3 = arith.constant 0 : index
    %c0_4 = arith.constant 0 : index
    %3 = vector.load %arg4[%c0_3, %c0_4] : memref<16x1xf32, #tpu.memory_space<vmem>>, vector<16x1xf32>
    %4 = vector.broadcast %3 : vector<16x1xf32> to vector<16x512xf32>
    %5 = arith.mulf %2, %4 : vector<16x512xf32>
    %c0_5 = arith.constant 0 : index
    %c0_6 = arith.constant 0 : index
    %6 = vector.load %arg5[%c0_5, %c0_6] : memref<1x512xf32, #tpu.memory_space<vmem>>, vector<1x512xf32>
    %7 = vector.broadcast %6 : vector<1x512xf32> to vector<16x512xf32>
    %8 = arith.mulf %5, %7 : vector<16x512xf32>
    %c512_i32 = arith.constant 512 : i32
    %9 = arith.muli %arg0, %c512_i32 : i32
    %10 = tpu.iota {dimensions = array<i32: 1>} : vector<1x512xi32>
    %11 = vector.broadcast %9 : i32 to vector<1x512xi32>
    %12 = arith.addi %11, %10 : vector<1x512xi32>
    %c0_7 = arith.constant 0 : index
    %c0_8 = arith.constant 0 : index
    %13 = vector.load %arg6[%c0_7, %c0_8] : memref<16x1xi32, #tpu.memory_space<vmem>>, vector<16x1xi32>
    %14 = vector.broadcast %12 : vector<1x512xi32> to vector<16x512xi32>
    %15 = vector.broadcast %13 : vector<16x1xi32> to vector<16x512xi32>
    %16 = arith.cmpi eq, %14, %15 : vector<16x512xi32>
    %cst_9 = arith.constant 0.000000e+00 : f32
    %17 = vector.broadcast %cst_9 : f32 to vector<16x512xf32>
    %18 = arith.select %16, %8, %17 : vector<16x512xi1>, vector<16x512xf32>
    %cst_10 = arith.constant dense<0.000000e+00> : vector<16xf32>
    %19 = vector.multi_reduction <add>, %18, %cst_10 [1] : vector<16x512xf32> to vector<16xf32>
    %20 = vector.shape_cast %19 : vector<16xf32> to vector<16x1xf32>
    %cst_11 = arith.constant 0.0333333351 : f32
    %21 = vector.broadcast %cst_11 : f32 to vector<16x1xf32>
    %22 = arith.mulf %20, %21 : vector<16x1xf32>
    %23 = arith.mulf %22, %22 : vector<16x1xf32>
    %cst_12 = arith.constant 1.000000e+00 : f32
    %24 = vector.broadcast %cst_12 : f32 to vector<16x1xf32>
    %25 = arith.subf %24, %23 : vector<16x1xf32>
    %cst_13 = arith.constant 0.000000e+00 : f32
    %26 = vector.broadcast %cst_13 : f32 to vector<16x1xf32>
    %27 = arith.maximumf %25, %26 : vector<16x1xf32>
    %28 = math.sqrt %27 : vector<16x1xf32>
    %cst_14 = arith.constant 0.87758255 : f32
    %29 = vector.broadcast %cst_14 : f32 to vector<16x1xf32>
    %30 = arith.mulf %22, %29 : vector<16x1xf32>
    %cst_15 = arith.constant 0.47942555 : f32
    %31 = vector.broadcast %cst_15 : f32 to vector<16x1xf32>
    %32 = arith.mulf %28, %31 : vector<16x1xf32>
    %33 = arith.subf %30, %32 : vector<16x1xf32>
    %cst_16 = arith.constant -0.87758255 : f32
    %34 = vector.broadcast %cst_16 : f32 to vector<16x1xf32>
    %35 = arith.cmpf ogt, %22, %34 : vector<16x1xf32>
    %cst_17 = arith.constant 0.239712775 : f32
    %36 = vector.broadcast %cst_17 : f32 to vector<16x1xf32>
    %37 = arith.subf %22, %36 : vector<16x1xf32>
    %38 = arith.select %35, %33, %37 : vector<16x1xi1>, vector<16x1xf32>
    %cst_18 = arith.constant 3.000000e+01 : f32
    %39 = vector.broadcast %cst_18 : f32 to vector<16x1xf32>
    %40 = arith.mulf %38, %39 : vector<16x1xf32>
    %41 = vector.shape_cast %40 : vector<16x1xf32> to vector<16x1xf32>
    %42 = vector.broadcast %41 : vector<16x1xf32> to vector<16x512xf32>
    %43 = arith.select %16, %42, %8 : vector<16x512xi1>, vector<16x512xf32>
    %c0_19 = arith.constant 0 : index
    %c0_20 = arith.constant 0 : index
    %44 = vector.load %arg7[%c0_19, %c0_20] : memref<16x512xf32, #tpu.memory_space<vmem>>, vector<16x512xf32>
    tpu.vector_store %arg7[%c0_19, %c0_20], %43 {strides = array<i32>} : memref<16x512xf32, #tpu.memory_space<vmem>>, vector<16x512xf32>,
    return
  }
  func.func @transform_0(%arg0: i32, %arg1: i32) -> (i32, i32) {
    %c0_i32 = arith.constant 0 : i32
    %c0_i32_0 = arith.constant 0 : i32
    return %arg1, %c0_i32 : i32, i32
  }
  func.func @transform_1(%arg0: i32, %arg1: i32) -> (i32, i32) {
    %c0_i32 = arith.constant 0 : i32
    %c0_i32_0 = arith.constant 0 : i32
    return %c0_i32, %arg0 : i32, i32
  }
  func.func @transform_2(%arg0: i32, %arg1: i32) -> (i32, i32) {
    %c0_i32 = arith.constant 0 : i32
    %c0_i32_0 = arith.constant 0 : i32
    return %arg1, %c0_i32 : i32, i32
  }
  func.func @transform_3(%arg0: i32, %arg1: i32) -> (i32, i32) {
    %c0_i32 = arith.constant 0 : i32
    %c0_i32_0 = arith.constant 0 : i32
    return %c0_i32, %arg0 : i32, i32
  }
  func.func @transform_4(%arg0: i32, %arg1: i32) -> (i32, i32) {
    %c0_i32 = arith.constant 0 : i32
    %c0_i32_0 = arith.constant 0 : i32
    return %arg1, %c0_i32 : i32, i32
  }
  func.func @transform_5(%arg0: i32, %arg1: i32) -> (i32, i32) {
    %c0_i32 = arith.constant 0 : i32
    return %arg1, %arg0 : i32, i32
  }
}

</mosaic_0001>

<bundles_post_ra>
// kernel: tpu_custom_call.1
= control target key start
LH: loop header
LB: loop body
LE: loop exit
PB: predicated region body
PF: predicated region fallthrough
CT: control target
= control target key end

     0   :  { %10 = vsyncpa [#allocation3], 0  ;;  %s4457_s0 = inlined_call_operand.vmem [shape: f32[16,128], index: 0, kind: input, shape index: {}]   ;;  %s4458_s1 = inlined_call_operand.hbm [shape: f32[128,1024], index: 1, kind: input, shape index: {}]   ;;  %s4459_s2 = inlined_call_operand.vmem [shape: f32[16,1], index: 2, kind: input, shape index: {}]   ;;  %s4460_s3 = inlined_call_operand.vmem [shape: f32[1,1024], index: 3, kind: input, shape index: {}]   ;;  %s4461_s4 = inlined_call_operand.vmem [shape: s32[16,1], index: 4, kind: input, shape index: {}]   ;;  %s4462_s5 = inlined_call_operand.hbm [shape: f32[16,1024], index: 5, kind: output, shape index: {}]  }
   0x1   :  { %12 = vsyncpa [#allocation3 + $0x1], 0 }
   0x2   :  { %13 = vsyncpa [#allocation4], 0 }
   0x3   :  { %15 = vsyncpa [#allocation4 + $0x1], 0  ;;  %s3199_s18 = smov 0   ;;  %s3201_s19 = smov 0  }
   0x4   :  { %s3203_s20 = smov 0   ;;  %s3205_s21 = smov 0  }
   0x5   :  { %s3207_s22 = smov 0   ;;  %s3209_s23 = smov 0  }
   0x6 LB: > { %s2521_s24 = sadd.s32 4294967295, %s3157_s23   ;;  %s2522_s25 = sadd.s32 4294967294, %s3157_s23   ;;  %s3157_s23 = sphi %s3209_s23, %s21_s23   ;;  %s3153_s22 = sphi %s3207_s22, %s4924_s22   ;;  %s3149_s21 = sphi %s3205_s21, %s4923_s21   ;;  %s3145_s20 = sphi %s3203_s20, %s4922_s20   ;;  %s3141_s19 = sphi %s3201_s19, %s4921_s19   ;;  %s3137_s18 = sphi %s3199_s18, %s4920_s18  }
   0x7   : > { %s33_s26 = sadd.s32 1, %s3153_s22  ;;  %s66_s27 = sadd.s32 1, %s3145_s20 }
   0x8   : > { %p35_p0 = scmp.ge.s32.totalorder %s33_s26, 2  ;;  %p73_p1 = scmp.ne.s32.totalorder %s3145_s20, %s3141_s19 }
   0x9   : > { %p74_p2 = scmp.eq.s32.totalorder %s3157_s23, 0  ;;  %p79_p3 = scmp.ne.s32.totalorder %s3141_s19, %s3137_s18 }
   0xa   : > { %s4926_s26 = smov (%p35_p0, %s33_s26), 0  ;;  %p80_p5 = scmp.eq.s32.totalorder %s2521_s24, 0 }
   0xb   : > { %p3240_p4 = por %p74_p2, %p73_p1  ;;  %s63_s29 = ssub.s32 %s3153_s22, %s4926_s26 }
   0xc   : > { %p183_p6 = scmp.eq.s32.totalorder %s2521_s24, 1  ;;  %p64_p7 = scmp.eq.s32.totalorder %s63_s29, 0 }
   0xd   : > { %p3246_p8 = por %p80_p5, %p79_p3  ;;  %p189_p10 = scmp.eq.s32.totalorder %s2522_s25, 1 }
   0xe   : > { %p3250_p9 = por %p183_p6, %p73_p1  ;;  %p2981_p13 = scmp.lt.s32.totalorder %s3157_s23, 2 }
   0xf   : > { %s3255_s7 = scalar_select %p64_p7, %s3145_s20, %s66_s27  }
  0x10   : > { %s4668_s6 = scalar_select %p3250_p9, 1, 0 }
  0x11   : > { %p3257_p11 = por %p189_p10, %p79_p3  ;;  %s236_s9 = sand.u32 1, %s3145_s20  }
  0x12   : > { %s2528_s10 = sshll.u32 %s236_s9, 9  ;;  %s2543_s11 = sshll.u32 %s3153_s22, 9 }
  0x13   : > { %s4669_s8 = scalar_select %p3257_p11, 1, 0 }
  0x14   : > { %s3268_s14 = scalar_lea.hbm %s4458_s1, %s2543_s11  ;;  %s240_s15 = scalar_lea.vmem [#allocation2], %s2528_s10 }
  0x15   : > { %s247_s16 = sshll.u32 %s240_s15, 4  ;;  %p3274_p0 = pnand %p2981_p13, %p3240_p4  ;;  %s3270_s16 = int_to_ptr.vmem [resolvable:$true] %s247_s16 }
  0x16   : > { %s3278_s24 = scalar_lea.sflag [#allocation3], %s236_s9  ;;  %s3045_s25 = scalar_lea.hbm %s3268_s14, 8192 }
  0x17   : > { %p3046_p1 = scmp.ne.s32.totalorder %s3268_s14, %s3045_s25  ;;  %p3047_p2 = pneg %p3274_p0 }
  0x18   : > { %s3050_s28 = scalar_lea.hbm %s4458_s1, 16384  ;;  %p3051_p4 = scmp.lt.u32.totalorder %s3268_s14, %s4458_s1 }
  0x19   : > { %p3048_p3 = pnand %p3047_p2, %p3046_p1  ;;  %p3052_p6 = scmp.lt.u32.totalorder %s3050_s28, %s3045_s25 }
  0x1a   : > { %p3054_p10 = scmp.lt.u32.totalorder %s3045_s25, %s3268_s14 }
  0x1b   : > { %p3049_p5 = pneg %p3048_p3  ;;  %p3053_p7 = por %p3052_p6, %p3051_p4 }
  0x1d   : > { %p3055_p13 = por %p3054_p10, %p3053_p7 }
  0x1f   : > { %p3056_p12 = pnand %p3055_p13, %p3049_p5 }
  0x21   : > { %3059 = shalt.err (!%p3056_p12)
}
  0x22   : > { %s3060_s9 = scalar_lea.vmem %s3270_s16, 8192  ;;  %s3159_s12 = smov [#allocation2]  }
  0x23   : > { %p3061_p1 = scmp.ne.s32.totalorder %s3270_s16, %s3060_s9  ;;  %s3065_s13 = sshll.u32 %s3159_s12, 4  ;;  %s3066_s13 = int_to_ptr.vmem [resolvable:$false] %s3065_s13 }
  0x24   : > { %s3067_s15 = scalar_lea.vmem %s3066_s13, 16384  ;;  %p3068_p9 = scmp.lt.s32.totalorder %s3270_s16, %s3066_s13 }
  0x25   : > { %p3063_p3 = pnand %p3061_p1, %p3047_p2  ;;  %p3069_p4 = scmp.lt.s32.totalorder %s3067_s15, %s3060_s9 }
  0x27   : > { %p3064_p11 = pneg %p3063_p3  ;;  %p3070_p6 = por %p3069_p4, %p3068_p9 }
  0x29   : > { %p3071_p7 = pnand %p3070_p6, %p3064_p11 }
  0x2b   : > { %3074 = shalt.err (!%p3071_p7)
}
  0x2c   : > { %s3160_s25 = smov 1024   ;;  %s3161_s27 = smov 512  }
  0x2d   : > { %s3162_s29 = smov 32   ;;  %p2531_p12 = scmp.ge.s32.totalorder %s3157_s23, 1 }
  0x2e   : > { %2976 = dma.hbm_to_vmem [thread:$0]  (!%p3274_p0), %s3268_s14, 8192, %s3270_s16, %s3278_s24, %s3160_s25, %s3161_s27, %s3162_s29  }
  0x2f   : > { %p263_p2 = scmp.lt.s32.totalorder %s3157_s23, 3 }
  0x31   : > { %p264_p5 = pnand %p2531_p12, %p263_p2 }
  0x33   : > { %267 = sbr.rel (%p264_p5) target bundleno = 723 (0x2d3), region = 40 }
  0x3a   : > { %s3309_s28 = sand.u32 1, %s3141_s19  }
  0x3b   : > { %s2532_s10 = sshll.u32 %s3309_s28, 9  ;;  %s270_s11 = scalar_lea.sflag [#allocation3], %s3309_s28 }
  0x3c   : > { %s3313_s9 = scalar_lea.vmem [#allocation2], %s2532_s10 }
  0x3d   : > { %3128 = dma.done.wait (%p3246_p8), %s270_s11, 8192  }
  0x3e   : > { %3130 = vsyncadd (%p3246_p8), %s270_s11, 4294959104  ;;  %v4464_v0 = vmov 0.0   ;;  %v348_v1 = vld [vmem:[%s3313_s9 + $0x8] sm:$0xff]  ;;  %v350_v3 = vld [vmem:[%s3313_s9 + $0x18] sm:$0xff]  ;;  %s2534_s11 = sshll.u32 %s3149_s21, 2  ;;  %s2533_s17 = sshll.u32 %s3309_s28, 6 }
  0x3f   : > { %507 = vmatprep.mubr.f32.mxu0 %v4464_v0  ;;  %1411 = vmatprep.mubr.f32.mxu1 %v4464_v0  ;;  %v352_v2 = vld [vmem:[%s3313_s9 + $0x28] sm:$0xff]  ;;  %v411_v4 = vand.u32 4294901760, %v348_v1  ;;  %v354_v6 = vld [vmem:[%s3313_s9 + $0x38] sm:$0xff]  ;;  %v1315_v7 = vand.u32 4294901760, %v350_v3  ;;  %v347_v8 = vld [vmem:[%s3313_s9] sm:$0xff]  ;;  %p333_p8 = scmp.lt.s32.totalorder %s2534_s11, 7 }
  0x40   : > { %v415_v5 = vand.u32 4294901760, %v352_v2  ;;  %v351_v9 = vld [vmem:[%s3313_s9 + $0x20] sm:$0xff]  ;;  %v1319_v10 = vand.u32 4294901760, %v354_v6  ;;  %v413_v11 = vand.u32 4294901760, %v347_v8  ;;  %v349_v13 = vld [vmem:[%s3313_s9 + $0x10] sm:$0xff]  ;;  %v356_v15 = vld [vmem:[%s3313_s9 + $0x48] sm:$0xff] }
  0x41   : > { %v417_v12 = vand.u32 4294901760, %v351_v9  ;;  %v353_v14 = vld [vmem:[%s3313_s9 + $0x30] sm:$0xff]  ;;  %v3332_v17 = vsub.f32 %v348_v1, %v411_v4  ;;  %v3336_v19 = vsub.f32 %v350_v3, %v1315_v7  ;;  %v360_v20 = vld [vmem:[%s3313_s9 + $0x68] sm:$0xff]  ;;  %v358_v21 = vld [vmem:[%s3313_s9 + $0x58] sm:$0xff]  ;;  %v1317_v29 = vand.u32 4294901760, %v349_v13  ;;  %s4928_s11 = smov (!%p333_p8, %s2534_s11), 7 }
  0x42   : > { %v3330_v16 = vpack.c.bf16 %v415_v5, %v411_v4  ;;  %v3334_v18 = vsub.f32 %v352_v2, %v415_v5  ;;  %v362_v22 = vld [vmem:[%s3313_s9 + $0x78] sm:$0xff]  ;;  %v3341_v23 = vpack.c.bf16 %v1319_v10, %v1315_v7  ;;  %v3343_v24 = vsub.f32 %v354_v6, %v1319_v10  ;;  %v355_v27 = vld [vmem:[%s3313_s9 + $0x40] sm:$0xff]  ;;  %v357_v37 = vld [vmem:[%s3313_s9 + $0x50] sm:$0xff]  ;;  %s335_s16 = scalar_lea.vmem %s4460_s3, %s4928_s11  ;;  %s318_s24 = scalar_lea.vmem [#allocation5], %s2533_s17 }
  0x43   : > { %4672 = vst [vmem:[#allocation9_spill] sm:$0xff] %v3332_v17  ;;  %4674 = vst [vmem:[#allocation11_spill] sm:$0xff] %v3336_v19  ;;  %v3345_v25 = vpack.c.bf16 %v417_v12, %v413_v11  ;;  %v3347_v26 = vsub.f32 %v347_v8, %v413_v11  ;;  %v3351_v28 = vsub.f32 %v351_v9, %v417_v12  ;;  %v1321_v30 = vand.u32 4294901760, %v353_v14  ;;  %v359_v32 = vld [vmem:[%s3313_s9 + $0x60] sm:$0xff]  ;;  %v361_v38 = vld [vmem:[%s3313_s9 + $0x70] sm:$0xff]  ;;  %s2383_s12 = sshll.u32 %s318_s24, 4  ;;  %s4392_s12 = int_to_ptr.vmem [resolvable:$true] %s2383_s12 }
  0x44   : > { %4671 = vst [vmem:[#allocation8_spill] sm:$0xff] %v3330_v16  ;;  %4673 = vst [vmem:[#allocation10_spill] sm:$0xff] %v3334_v18  ;;  %2546 = vmatprep.subr.bf16.mxu0 %v3330_v16  ;;  %v419_v31 = vand.u32 4294901760, %v356_v15  ;;  %2738 = vmatprep.subr.bf16.mxu1 %v3341_v23  ;;  %v423_v33 = vand.u32 4294901760, %v360_v20  ;;  %v1323_v34 = vand.u32 4294901760, %v358_v21  ;;  %v1327_v35 = vand.u32 4294901760, %v362_v22 }
  0x45   : > { %4675 = vst [vmem:[#allocation12_spill] sm:$0xff] %v3341_v23  ;;  %4676 = vst [vmem:[#allocation13_spill] sm:$0xff] %v3343_v24  ;;  %2548 = vmatpush1.bf16.msra.mxu0 %v3345_v25  ;;  %v421_v36 = vand.u32 4294901760, %v355_v27  ;;  %v3358_v39 = vpack.c.bf16 %v1321_v30, %v1317_v29  ;;  %v3360_v40 = vsub.f32 %v349_v13, %v1317_v29  ;;  %v364_v43 = vld [vmem:[%s3313_s9 + $0x88] sm:$0xff]  ;;  %v366_v45 = vld [vmem:[%s3313_s9 + $0x98] sm:$0xff]  ;;  %v425_v52 = vand.u32 4294901760, %v359_v32 }
  0x46   : > { %4677 = vst [vmem:[#allocation14_spill] sm:$0xff] %v3345_v25  ;;  %4678 = vst [vmem:[#allocation15_spill] sm:$0xff] %v3347_v26  ;;  %v3362_v41 = vsub.f32 %v353_v14, %v1321_v30  ;;  %v3364_v42 = vsub.f32 %v356_v15, %v419_v31  ;;  %v368_v44 = vld [vmem:[%s3313_s9 + $0xa8] sm:$0xff]  ;;  %v3369_v46 = vpack.c.bf16 %v423_v33, %v419_v31  ;;  %v370_v50 = vld [vmem:[%s3313_s9 + $0xb8] sm:$0xff]  ;;  %v1325_v54 = vand.u32 4294901760, %v357_v37  ;;  %s3075_s27 = scalar_lea.vmem %s4392_s12, 1024 }
  0x47   : > { %4679 = vst [vmem:[#allocation16_spill] sm:$0xff] %v3351_v28  ;;  %4680 = vst [vmem:[#allocation17_spill] sm:$0xff] %v3358_v39  ;;  %v3371_v47 = vsub.f32 %v360_v20, %v423_v33  ;;  %v3373_v48 = vpack.c.bf16 %v1327_v35, %v1323_v34  ;;  %v3375_v49 = vsub.f32 %v358_v21, %v1323_v34  ;;  %2740 = vmatpush1.bf16.msra.mxu1 %v3358_v39  ;;  %v363_v59 = vld [vmem:[%s3313_s9 + $0x80] sm:$0xff]  ;;  %v365_v2 = vld [vmem:[%s3313_s9 + $0x90] sm:$0xff]  ;;  %p3076_p9 = scmp.ne.s32.totalorder %s4392_s12, %s3075_s27  ;;  %p4917_p11 = scmp.ne.s32.totalorder %s4668_s6, 0 }
  0x48   : > { %4681 = vst [vmem:[#allocation18_spill] sm:$0xff] %v3360_v40  ;;  %4682 = vst [vmem:[#allocation19_spill] sm:$0xff] %v3362_v41  ;;  %v3379_v51 = vsub.f32 %v362_v22, %v1327_v35  ;;  %v3381_v53 = vsub.f32 %v355_v27, %v421_v36  ;;  %2550 = vmatprep.subr.bf16.mxu0 %v3369_v46  ;;  %v1329_v55 = vand.u32 4294901760, %v361_v38  ;;  %v427_v56 = vand.u32 4294901760, %v364_v43  ;;  %v367_v60 = vld [vmem:[%s3313_s9 + $0xa0] sm:$0xff]  ;;  %v369_v3 = vld [vmem:[%s3313_s9 + $0xb0] sm:$0xff] }
  0x49   : > { %4683 = vst [vmem:[#allocation20_spill] sm:$0xff] %v3369_v46  ;;  %4684 = vst [vmem:[#allocation21_spill] sm:$0xff] %v3373_v48  ;;  %2742 = vmatprep.subr.bf16.mxu1 %v3373_v48  ;;  %v431_v57 = vand.u32 4294901760, %v368_v44  ;;  %v1331_v58 = vand.u32 4294901760, %v366_v45  ;;  %v3387_v61 = vpack.c.bf16 %v425_v52, %v421_v36  ;;  %v3389_v62 = vsub.f32 %v359_v32, %v425_v52  ;;  %v372_v4 = vld [vmem:[%s3313_s9 + $0xc8] sm:$0xff]  ;;  %v374_v10 = vld [vmem:[%s3313_s9 + $0xd8] sm:$0xff]  ;;  %p3077_p0 = pnand %p3076_p9, %p4917_p11 }
  0x4a   : > { %v3391_v63 = vsub.f32 %v357_v37, %v1325_v54  ;;  %v1335_v1 = vand.u32 4294901760, %v370_v50  ;;  %v3396_v5 = vpack.c.bf16 %v1329_v55, %v1325_v54  ;;  %v3398_v6 = vsub.f32 %v361_v38, %v1329_v55  ;;  %v376_v9 = vld [vmem:[%s3313_s9 + $0xe8] sm:$0xff]  ;;  %v378_v11 = vld [vmem:[%s3313_s9 + $0xf8] sm:$0xff]  ;;  %v371_v33 = vld [vmem:[%s3313_s9 + $0xc0] sm:$0xff]  ;;  %s3165_s29 = smov [#allocation5]  }
  0x4b   : > { %4685 = vst [vmem:[#allocation22_spill] sm:$0xff] %v3387_v61  ;;  %v3400_v7 = vpack.c.bf16 %v431_v57, %v427_v56  ;;  %v3402_v8 = vsub.f32 %v364_v43, %v427_v56  ;;  %2552 = vmatpush1.bf16.msra.mxu0 %v3387_v61  ;;  %v3408_v12 = vsub.f32 %v368_v44, %v431_v57  ;;  %v429_v20 = vand.u32 4294901760, %v363_v59  ;;  %v375_v38 = vld [vmem:[%s3313_s9 + $0xe0] sm:$0xff]  ;;  %v373_v43 = vld [vmem:[%s3313_s9 + $0xd0] sm:$0xff]  ;;  %v380_v55 = vld [vmem:[%s3313_s9 + $0x108] sm:$0xff]  ;;  %p3078_p10 = pneg %p3077_p0  ;;  %s3079_s10 = sshll.u32 %s3165_s29, 4  ;;  %s3080_s10 = int_to_ptr.vmem [resolvable:$false] %s3079_s10 }
  0x4c   : > { %4686 = vst [vmem:[#allocation23_spill] sm:$0xff] %v3396_v5  ;;  %v3410_v13 = vpack.c.bf16 %v1335_v1, %v1331_v58  ;;  %v3412_v14 = vsub.f32 %v366_v45, %v1331_v58  ;;  %v3414_v15 = vsub.f32 %v370_v50, %v1335_v1  ;;  %2744 = vmatpush1.bf16.msra.mxu1 %v3396_v5  ;;  %v433_v21 = vand.u32 4294901760, %v367_v60  ;;  %v377_v44 = vld [vmem:[%s3313_s9 + $0xf0] sm:$0xff]  ;;  %v384_v56 = vld [vmem:[%s3313_s9 + $0x128] sm:$0xff]  ;;  %v382_v57 = vld [vmem:[%s3313_s9 + $0x118] sm:$0xff]  ;;  %s3081_s11 = scalar_lea.vmem %s3080_s10, 2048  ;;  %p3082_p13 = scmp.lt.s32.totalorder %s4392_s12, %s3080_s10 }
  0x4d   : > { %4687 = vst [vmem:[#allocation24_spill] sm:$0xff] %v3400_v7  ;;  %2554 = vmatprep.subr.bf16.mxu0 %v3400_v7  ;;  %v1333_v22 = vand.u32 4294901760, %v365_v2  ;;  %v1337_v27 = vand.u32 4294901760, %v369_v3  ;;  %v435_v29 = vand.u32 4294901760, %v372_v4  ;;  %v439_v30 = vand.u32 4294901760, %v376_v9  ;;  %v387_v61 = vld [vmem:[%s3313_s9 + $0x140] sm:$0xff]  ;;  %p3083_p1 = scmp.lt.s32.totalorder %s3081_s11, %s3075_s27 }
  0x4e   : > { %4688 = vst [vmem:[#allocation25_spill] sm:$0xff] %v3410_v13  ;;  %2746 = vmatprep.subr.bf16.mxu1 %v3410_v13  ;;  %v1339_v31 = vand.u32 4294901760, %v374_v10  ;;  %v1343_v32 = vand.u32 4294901760, %v378_v11  ;;  %v3420_v34 = vpack.c.bf16 %v433_v21, %v429_v20  ;;  %v3422_v35 = vsub.f32 %v363_v59, %v429_v20  ;;  %v392_v13 = vld [vmem:[%s3313_s9 + $0x168] sm:$0xff]  ;;  %v391_v48 = vld [vmem:[%s3313_s9 + $0x160] sm:$0xff]  ;;  %v393_v16 = vld [vmem:[%s3313_s9 + $0x170] sm:$0xff] }
  0x4f   : > { %v3424_v36 = vsub.f32 %v367_v60, %v433_v21  ;;  %v3426_v37 = vpack.c.bf16 %v1337_v27, %v1333_v22  ;;  %v3431_v45 = vsub.f32 %v365_v2, %v1333_v22  ;;  %v3433_v50 = vsub.f32 %v369_v3, %v1337_v27  ;;  %v386_v21 = vld [vmem:[%s3313_s9 + $0x138] sm:$0xff]  ;;  %p3084_p3 = por %p3083_p1, %p3082_p13 }
  0x50   : > { %4689 = vst [vmem:[#allocation26_spill] sm:$0xff] %v3420_v34  ;;  %v3435_v52 = vpack.c.bf16 %v439_v30, %v435_v29  ;;  %v3437_v54 = vsub.f32 %v372_v4, %v435_v29  ;;  %2556 = vmatpush1.bf16.msra.mxu0 %v3420_v34  ;;  %v3444_v58 = vsub.f32 %v376_v9, %v439_v30  ;;  %v437_v1 = vand.u32 4294901760, %v371_v33  ;;  %v379_v29 = vld [vmem:[%s3313_s9 + $0x100] sm:$0xff]  ;;  %v388_v34 = vld [vmem:[%s3313_s9 + $0x148] sm:$0xff] }
  0x51   : > { %4690 = vst [vmem:[#allocation27_spill] sm:$0xff] %v3426_v37  ;;  %2748 = vmatpush1.bf16.msra.mxu1 %v3426_v37  ;;  %v3446_v59 = vpack.c.bf16 %v1343_v32, %v1339_v31  ;;  %v3448_v60 = vsub.f32 %v374_v10, %v1339_v31  ;;  %v3451_v2 = vsub.f32 %v378_v11, %v1343_v32  ;;  %v441_v3 = vand.u32 4294901760, %v375_v38  ;;  %v383_v30 = vld [vmem:[%s3313_s9 + $0x120] sm:$0xff]  ;;  %v381_v31 = vld [vmem:[%s3313_s9 + $0x110] sm:$0xff]  ;;  %p3085_p4 = pnand %p3084_p3, %p3078_p10 }
  0x52   : > { %4691 = vst [vmem:[#allocation28_spill] sm:$0xff] %v3435_v52  ;;  %2558 = vmatprep.subr.bf16.mxu0 %v3435_v52  ;;  %v1341_v4 = vand.u32 4294901760, %v373_v43  ;;  %v1345_v20 = vand.u32 4294901760, %v377_v44  ;;  %v3455_v9 = vsub.f32 %v371_v33, %v437_v1  ;;  %v443_v22 = vand.u32 4294901760, %v380_v55  ;;  %v385_v37 = vld [vmem:[%s3313_s9 + $0x130] sm:$0xff] }
  0x53   : > { %4692 = vst [vmem:[#allocation29_spill] sm:$0xff] %v3446_v59  ;;  %2750 = vmatprep.subr.bf16.mxu1 %v3446_v59  ;;  %v447_v27 = vand.u32 4294901760, %v384_v56  ;;  %v1347_v10 = vand.u32 4294901760, %v382_v57  ;;  %v3460_v0 = vpack.c.bf16 %v441_v3, %v437_v1  ;;  %v3462_v11 = vsub.f32 %v375_v38, %v441_v3 }
  0x54   : > { %v3464_v32 = vpack.c.bf16 %v1345_v20, %v1341_v4  ;;  %v3466_v52 = vsub.f32 %v373_v43, %v1341_v4  ;;  %v3471_v33 = vsub.f32 %v377_v44, %v1345_v20  ;;  %v3475_v7 = vsub.f32 %v380_v55, %v443_v22  ;;  %v390_v20 = vld [vmem:[%s3313_s9 + $0x158] sm:$0xff] }
  0x55   : > { %4693 = vst [vmem:[#allocation30_spill] sm:$0xff] %v3460_v0  ;;  %4694 = vst [vmem:[#allocation31_spill] sm:$0xff] %v3462_v11  ;;  %v3473_v59 = vpack.c.bf16 %v447_v27, %v443_v22  ;;  %v3477_v5 = vsub.f32 %v384_v56, %v447_v27  ;;  %2560 = vmatpush1.bf16.msra.mxu0 %v3460_v0  ;;  %v1351_v38 = vand.u32 4294901760, %v386_v21  ;;  %v445_v1 = vand.u32 4294901760, %v379_v29  ;;  %v394_v22 = vld [vmem:[%s3313_s9 + $0x178] sm:$0xff] }
  0x56   : > { %4695 = vst [vmem:[#allocation32_spill] sm:$0xff] %v3464_v32  ;;  %4696 = vst [vmem:[#allocation33_spill] sm:$0xff] %v3466_v52  ;;  %2752 = vmatpush1.bf16.msra.mxu1 %v3464_v32  ;;  %v3481_v43 = vsub.f32 %v382_v57, %v1347_v10  ;;  %v449_v44 = vand.u32 4294901760, %v383_v30  ;;  %v1349_v3 = vand.u32 4294901760, %v381_v31  ;;  %v1353_v4 = vand.u32 4294901760, %v385_v37 }
  0x57   : > { %4697 = vst [vmem:[#allocation34_spill] sm:$0xff] %v3471_v33  ;;  %4698 = vst [vmem:[#allocation35_spill] sm:$0xff] %v3473_v59  ;;  %2562 = vmatprep.subr.bf16.mxu0 %v3473_v59  ;;  %v451_v55 = vand.u32 4294901760, %v388_v34  ;;  %v455_v56 = vand.u32 4294901760, %v392_v13  ;;  %v3486_v27 = vpack.c.bf16 %v1351_v38, %v1347_v10  ;;  %v3488_v32 = vsub.f32 %v386_v21, %v1351_v38  ;;  %v389_v59 = vld [vmem:[%s3313_s9 + $0x150] sm:$0xff]  ;;  %v396_v10 = vld [vmem:[%s3313_s9 + $0x188] sm:$0xff] }
  0x58   : > { %4699 = vst [vmem:[#allocation36_spill] sm:$0xff] %v3475_v7  ;;  %4700 = vst [vmem:[#allocation37_spill] sm:$0xff] %v3477_v5  ;;  %v3490_v57 = vpack.c.bf16 %v449_v44, %v445_v1  ;;  %v3492_v0 = vsub.f32 %v379_v29, %v445_v1  ;;  %v3497_v46 = vsub.f32 %v383_v30, %v449_v44  ;;  %v1355_v38 = vand.u32 4294901760, %v390_v20 }
  0x59   : > { %4701 = vst [vmem:[#allocation38_spill] sm:$0xff] %v3481_v43  ;;  %4702 = vst [vmem:[#allocation39_spill] sm:$0xff] %v3486_v27  ;;  %v3499_v39 = vpack.c.bf16 %v1353_v4, %v1349_v3  ;;  %v3501_v25 = vsub.f32 %v381_v31, %v1349_v3  ;;  %v3503_v23 = vsub.f32 %v385_v37, %v1353_v4  ;;  %v400_v43 = vld [vmem:[%s3313_s9 + $0x1a8] sm:$0xff]  ;;  %2754 = vmatprep.subr.bf16.mxu1 %v3486_v27 }
  0x5a   : > { %4703 = vst [vmem:[#allocation40_spill] sm:$0xff] %v3488_v32  ;;  %4704 = vst [vmem:[#allocation41_spill] sm:$0xff] %v3490_v57  ;;  %2564 = vmatpush1.bf16.msra.mxu0 %v3490_v57  ;;  %v3510_v21 = vpack.c.bf16 %v455_v56, %v451_v55  ;;  %v3512_v29 = vsub.f32 %v388_v34, %v451_v55  ;;  %v3514_v30 = vsub.f32 %v392_v13, %v455_v56  ;;  %v398_v55 = vld [vmem:[%s3313_s9 + $0x198] sm:$0xff]  ;;  %v408_v32 = vld [vmem:[%s3313_s9 + $0x1e8] sm:$0xff] }
  0x5b   : > { %4705 = vst [vmem:[#allocation42_spill] sm:$0xff] %v3492_v0  ;;  %4706 = vst [vmem:[#allocation43_spill] sm:$0xff] %v3497_v46  ;;  %2756 = vmatpush1.bf16.msra.mxu1 %v3499_v39  ;;  %v1359_v37 = vand.u32 4294901760, %v394_v22  ;;  %v453_v31 = vand.u32 4294901760, %v387_v61  ;;  %v457_v1 = vand.u32 4294901760, %v391_v48  ;;  %v1357_v44 = vand.u32 4294901760, %v389_v59 }
  0x5c   : > { %4707 = vst [vmem:[#allocation44_spill] sm:$0xff] %v3499_v39  ;;  %4708 = vst [vmem:[#allocation45_spill] sm:$0xff] %v3501_v25  ;;  %2566 = vmatprep.subr.bf16.mxu0 %v3510_v21  ;;  %v3518_v3 = vsub.f32 %v390_v20, %v1355_v38  ;;  %v1361_v4 = vand.u32 4294901760, %v393_v16  ;;  %v459_v34 = vand.u32 4294901760, %v396_v10  ;;  %v463_v13 = vand.u32 4294901760, %v400_v43  ;;  %v402_v56 = vld [vmem:[%s3313_s9 + $0x1b8] sm:$0xff] }
  0x5d   : > { %4709 = vst [vmem:[#allocation46_spill] sm:$0xff] %v3503_v23  ;;  %4710 = vst [vmem:[#allocation47_spill] sm:$0xff] %v3510_v21  ;;  %v3522_v39 = vpack.c.bf16 %v1359_v37, %v1355_v38  ;;  %v3524_v57 = vsub.f32 %v394_v22, %v1359_v37  ;;  %v3526_v27 = vpack.c.bf16 %v457_v1, %v453_v31  ;;  %v399_v21 = vld [vmem:[%s3313_s9 + $0x1a0] sm:$0xff]  ;;  %v397_v20 = vld [vmem:[%s3313_s9 + $0x190] sm:$0xff]  ;;  %v1363_v37 = vand.u32 4294901760, %v398_v55 }
  0x5e   : > { %4711 = vst [vmem:[#allocation48_spill] sm:$0xff] %v3512_v29  ;;  %4712 = vst [vmem:[#allocation49_spill] sm:$0xff] %v3514_v30  ;;  %v3528_v30 = vsub.f32 %v387_v61, %v453_v31  ;;  %v395_v29 = vld [vmem:[%s3313_s9 + $0x180] sm:$0xff]  ;;  %v3535_v23 = vpack.c.bf16 %v1361_v4, %v1357_v44  ;;  %v3537_v25 = vsub.f32 %v389_v59, %v1357_v44  ;;  %v401_v0 = vld [vmem:[%s3313_s9 + $0x1b0] sm:$0xff]  ;;  %v465_v31 = vand.u32 4294901760, %v399_v21 }
  0x5f   : > { %4713 = vst [vmem:[#allocation50_spill] sm:$0xff] %v3518_v3  ;;  %4714 = vst [vmem:[#allocation51_spill] sm:$0xff] %v3522_v39  ;;  %v3533_v3 = vsub.f32 %v391_v48, %v457_v1  ;;  %v3539_v46 = vsub.f32 %v393_v16, %v1361_v4  ;;  %v404_v38 = vld [vmem:[%s3313_s9 + $0x1c8] sm:$0xff]  ;;  %2758 = vmatprep.subr.bf16.mxu1 %v3522_v39  ;;  %2568 = vmatpush1.bf16.msra.mxu0 %v3526_v27  ;;  %v1367_v16 = vand.u32 4294901760, %v402_v56 }
  0x60   : > { %4715 = vst [vmem:[#allocation52_spill] sm:$0xff] %v3524_v57  ;;  %4716 = vst [vmem:[#allocation53_spill] sm:$0xff] %v3526_v27  ;;  %v3546_v61 = vpack.c.bf16 %v463_v13, %v459_v34  ;;  %v3548_v22 = vsub.f32 %v396_v10, %v459_v34  ;;  %v3550_v48 = vsub.f32 %v400_v43, %v463_v13  ;;  %2760 = vmatpush1.bf16.msra.mxu1 %v3535_v23  ;;  %v406_v43 = vld [vmem:[%s3313_s9 + $0x1d8] sm:$0xff] }
  0x61   : > { %4717 = vst [vmem:[#allocation54_spill] sm:$0xff] %v3528_v30  ;;  %4718 = vst [vmem:[#allocation55_spill] sm:$0xff] %v3533_v3  ;;  %v461_v59 = vand.u32 4294901760, %v395_v29  ;;  %v1365_v1 = vand.u32 4294901760, %v397_v20  ;;  %v3554_v44 = vsub.f32 %v398_v55, %v1363_v37  ;;  %v1369_v4 = vand.u32 4294901760, %v401_v0  ;;  %v410_v13 = vld [vmem:[%s3313_s9 + $0x1f8] sm:$0xff] }
  0x62   : > { %4719 = vst [vmem:[#allocation56_spill] sm:$0xff] %v3535_v23  ;;  %4720 = vst [vmem:[#allocation57_spill] sm:$0xff] %v3537_v25  ;;  %2570 = vmatprep.subr.bf16.mxu0 %v3546_v61  ;;  %v467_v10 = vand.u32 4294901760, %v404_v38  ;;  %v471_v34 = vand.u32 4294901760, %v408_v32  ;;  %v3558_v27 = vpack.c.bf16 %v1367_v16, %v1363_v37  ;;  %v3560_v23 = vsub.f32 %v402_v56, %v1367_v16  ;;  %v405_v25 = vld [vmem:[%s3313_s9 + $0x1d0] sm:$0xff] }
  0x63   : > { %4721 = vst [vmem:[#allocation58_spill] sm:$0xff] %v3539_v46  ;;  %4722 = vst [vmem:[#allocation59_spill] sm:$0xff] %v3546_v61  ;;  %v3562_v39 = vpack.c.bf16 %v465_v31, %v461_v59  ;;  %v407_v46 = vld [vmem:[%s3313_s9 + $0x1e0] sm:$0xff]  ;;  %v3569_v61 = vsub.f32 %v399_v21, %v465_v31  ;;  %v3571_v55 = vpack.c.bf16 %v1369_v4, %v1365_v1  ;;  %v409_v30 = vld [vmem:[%s3313_s9 + $0x1f0] sm:$0xff]  ;;  %v1371_v16 = vand.u32 4294901760, %v406_v43 }
  0x64   : > { %4723 = vst [vmem:[#allocation60_spill] sm:$0xff] %v3548_v22  ;;  %4724 = vst [vmem:[#allocation61_spill] sm:$0xff] %v3550_v48  ;;  %v3564_v48 = vsub.f32 %v395_v29, %v461_v59  ;;  %v403_v22 = vld [vmem:[%s3313_s9 + $0x1c0] sm:$0xff]  ;;  %v3575_v3 = vsub.f32 %v401_v0, %v1369_v4  ;;  %2762 = vmatprep.subr.bf16.mxu1 %v3558_v27  ;;  %v3580_v56 = vpack.c.bf16 %v471_v34, %v467_v10  ;;  %s2535_s9 = sshll.u32 %s3149_s21, 9  ;;  %s2367_s21 = scalar_lea.sflag [#allocation4], %s3309_s28 }
  0x65   : > { %4725 = vst [vmem:[#allocation62_spill] sm:$0xff] %v3554_v44  ;;  %4726 = vst [vmem:[#allocation63_spill] sm:$0xff] %v3558_v27  ;;  %v3573_v44 = vsub.f32 %v397_v20, %v1365_v1  ;;  %2572 = vmatpush1.bf16.msra.mxu0 %v3562_v39  ;;  %v3582_v29 = vsub.f32 %v404_v38, %v467_v10  ;;  %v3584_v37 = vsub.f32 %v408_v32, %v471_v34  ;;  %s4390_s25 = scalar_lea.hbm %s4462_s5, %s2535_s9 }
  0x66   : > { %4727 = vst [vmem:[#allocation64_spill] sm:$0xff] %v3562_v39  ;;  %4728 = vst [vmem:[#allocation65_spill] sm:$0xff] %v3571_v55  ;;  %2764 = vmatpush1.bf16.msra.mxu1 %v3571_v55  ;;  %v1375_v21 = vand.u32 4294901760, %v410_v13  ;;  %v469_v59 = vand.u32 4294901760, %v403_v22  ;;  %v473_v20 = vand.u32 4294901760, %v407_v46  ;;  %v1373_v31 = vand.u32 4294901760, %v405_v25  ;;  %2574 = vmatprep.subr.bf16.mxu0 %v3580_v56 }
  0x67   : > { %4729 = vst [vmem:[#allocation66_spill] sm:$0xff] %v3580_v56  ;;  %4730 = vst [vmem:[#allocation67_spill] sm:$0xff] %v3584_v37  ;;  %v3588_v0 = vsub.f32 %v406_v43, %v1371_v16  ;;  %v1377_v1 = vand.u32 4294901760, %v409_v30  ;;  %v4540_v39 = vand.u32 4294901760, %v3334_v18  ;;  %v345_v55 = vld [vmem:[%s4457_s0] sm:$0xff] }
  0x68   : > { %v3592_v38 = vpack.c.bf16 %v1375_v21, %v1371_v16  ;;  %v3594_v32 = vsub.f32 %v410_v13, %v1375_v21  ;;  %v3596_v10 = vpack.c.bf16 %v473_v20, %v469_v59  ;;  %v3598_v34 = vsub.f32 %v403_v22, %v469_v59 }
  0x69   : > { %v3603_v56 = vsub.f32 %v407_v46, %v473_v20  ;;  %v3605_v43 = vpack.c.bf16 %v1377_v1, %v1373_v31  ;;  %v3607_v27 = vsub.f32 %v405_v25, %v1373_v31  ;;  %v3609_v4 = vsub.f32 %v409_v30, %v1377_v1 }
  0x6a   : > { %4731 = vst [vmem:[#allocation68_spill] sm:$0xff] %v3592_v38  ;;  %4732 = vst [vmem:[#allocation69_spill] sm:$0xff] %v3596_v10  ;;  %2766 = vmatprep.subr.bf16.mxu1 %v3592_v38  ;;  %2576 = vmatpush1.bf16.msra.mxu0 %v3596_v10  ;;  %v4738_v13 = vand.u32 4294901760, %v3332_v17  ;;  %v545_v16 = vsub.f32 %v3334_v18, %v4540_v39  ;;  %v4545_v46 = vand.u32 4294901760, %v3336_v19  ;;  %v4550_v21 = vand.u32 4294901760, %v3343_v24 }
  0x6b   : > { %4733 = vst [vmem:[#allocation70_spill] sm:$0xff] %v3598_v34  ;;  %4734 = vst [vmem:[#allocation71_spill] sm:$0xff] %v3603_v56  ;;  %2768 = vmatpush1.bf16.msra.mxu1 %v3605_v43  ;;  %v3622_v25 = vand.u32 4294901760, %v345_v55  ;;  %v4557_v30 = vand.u32 4294901760, %v3347_v26  ;;  %v4558_v59 = vand.u32 4294901760, %v3351_v28  ;;  %v4562_v20 = vand.u32 4294901760, %v3360_v40 }
  0x6c   : > { %4735 = vst [vmem:[#allocation72_spill] sm:$0xff] %v3605_v43  ;;  %4736 = vst [vmem:[#allocation73_spill] sm:$0xff] %v3607_v27  ;;  %v533_v22 = vsub.f32 %v3332_v17, %v4738_v13  ;;  %v546_v1 = vand.u32 4294901760, %v545_v16  ;;  %v1437_v13 = vsub.f32 %v3336_v19, %v4545_v46  ;;  %v1449_v39 = vsub.f32 %v3343_v24, %v4550_v21 }
  0x6d   : > { %4737 = vst [vmem:[#allocation74_spill] sm:$0xff] %v3609_v4  ;;  %4739 = vst [vmem:[#allocation75_spill] sm:$0xff] %v3622_v25  ;;  %v3634_v43 = vsub.f32 %v345_v55, %v3622_v25  ;;  %v539_v10 = vsub.f32 %v3347_v26, %v4557_v30  ;;  %v1443_v16 = vsub.f32 %v3360_v40, %v4562_v20  ;;  %v4561_v21 = vand.u32 4294901760, %v3362_v41 }
  0x6e   : > { %v534_v31 = vand.u32 4294901760, %v533_v22  ;;  %v551_v22 = vsub.f32 %v3351_v28, %v4558_v59  ;;  %v1438_v38 = vand.u32 4294901760, %v1437_v13  ;;  %v1450_v19 = vand.u32 4294901760, %v1449_v39 }
  0x6f   : > { %4740 = vst [vmem:[#allocation76_spill] sm:$0xff] %v3634_v43  ;;  %v3647_v55 = vand.u32 4294901760, %v3634_v43  ;;  %v540_v25 = vand.u32 4294901760, %v539_v10  ;;  %v1444_v18 = vand.u32 4294901760, %v1443_v16  ;;  %v1455_v59 = vsub.f32 %v3362_v41, %v4561_v21 }
  0x70   : > { %v2577_v46 = vpack.c.bf16 %v546_v1, %v534_v31  ;;  %v552_v24 = vand.u32 4294901760, %v551_v22  ;;  %v2769_v30 = vpack.c.bf16 %v1450_v19, %v1438_v38  ;;  %v4564_v28 = vand.u32 4294901760, %v3364_v42 }
  0x71   : > { %4741 = vst [vmem:[#allocation77_spill] sm:$0xff] %v3647_v55  ;;  %v4563_v31 = vand.u32 4294901760, %v3371_v47  ;;  %v511_v39 = vsub.f32 %v3634_v43, %v3647_v55  ;;  %v4565_v13 = vand.u32 4294901760, %v3375_v49  ;;  %v4568_v10 = vand.u32 4294901760, %v3379_v51 }
  0x72   : > { %2578 = vmatprep.subr.bf16.mxu0 %v2577_v46  ;;  %v2579_v1 = vpack.c.bf16 %v552_v24, %v540_v25  ;;  %2770 = vmatprep.subr.bf16.mxu1 %v2769_v30  ;;  %v1456_v22 = vand.u32 4294901760, %v1455_v59  ;;  %v557_v19 = vsub.f32 %v3364_v42, %v4564_v28  ;;  %v4569_v46 = vand.u32 4294901760, %v3381_v53 }
  0x73   : > { %v569_v38 = vsub.f32 %v3371_v47, %v4563_v31  ;;  %v512_v16 = vand.u32 4294901760, %v511_v39  ;;  %v1461_v24 = vsub.f32 %v3375_v49, %v4565_v13  ;;  %v1473_v25 = vsub.f32 %v3379_v51, %v4568_v10 }
  0x74   : > { %v4574_v30 = vand.u32 4294901760, %v3389_v62  ;;  %v2771_v59 = vpack.c.bf16 %v1456_v22, %v1444_v18  ;;  %v558_v21 = vand.u32 4294901760, %v557_v19  ;;  %v563_v31 = vsub.f32 %v3381_v53, %v4569_v46 }
  0x75   : > { %v570_v20 = vand.u32 4294901760, %v569_v38  ;;  %513 = vmatmul.mubr.f32.vlgmr.msra.gmra.mrb[0].mxu0 %v512_v16  ;;  %1417 = vmatmul.mubr.f32.vlgmr.msra.gmra.mrb[0].mxu1 %v512_v16  ;;  %v1462_v39 = vand.u32 4294901760, %v1461_v24  ;;  %v1474_v28 = vand.u32 4294901760, %v1473_v25  ;;  %v4570_v55 = vand.u32 4294901760, %v3391_v63 }
  0x76   : > { %v575_v13 = vsub.f32 %v3389_v62, %v4574_v30  ;;  %2580 = vmatpush1.bf16.msra.mxu0 %v2579_v1  ;;  %2772 = vmatpush1.bf16.msra.mxu1 %v2771_v59  ;;  %v564_v18 = vand.u32 4294901760, %v563_v31  ;;  %v4571_v22 = vand.u32 4294901760, %v3398_v6  ;;  %v4572_v19 = vand.u32 4294901760, %v3402_v8 }
  0x77   : > { %v2581_v10 = vpack.c.bf16 %v570_v20, %v558_v21  ;;  %v2773_v38 = vpack.c.bf16 %v1474_v28, %v1462_v39  ;;  %v1467_v16 = vsub.f32 %v3391_v63, %v4570_v55  ;;  %v4573_v24 = vand.u32 4294901760, %v3408_v12 }
  0x78   : > { %v576_v46 = vand.u32 4294901760, %v575_v13  ;;  %v4742_v25 = vmov 0.0   ;;  %v1479_v21 = vsub.f32 %v3398_v6, %v4571_v22  ;;  %v581_v28 = vsub.f32 %v3402_v8, %v4572_v19 }
  0x79   : > { %518 = vmatprep.mubr.f32.mxu0 %v4742_v25  ;;  %1422 = vmatprep.mubr.f32.mxu1 %v4742_v25  ;;  %v4575_v20 = vand.u32 4294901760, %v3412_v14  ;;  %v4586_v31 = vand.u32 4294901760, %v3414_v15  ;;  %v1468_v13 = vand.u32 4294901760, %v1467_v16  ;;  %v593_v59 = vsub.f32 %v3408_v12, %v4573_v24 }
  0x7a   : > { %2582 = vmatprep.subr.bf16.mxu0 %v2581_v10  ;;  %2774 = vmatprep.subr.bf16.mxu1 %v2773_v38  ;;  %v2583_v1 = vpack.c.bf16 %v576_v46, %v564_v18  ;;  %v4578_v10 = vand.u32 4294901760, %v3422_v35  ;;  %v1480_v39 = vand.u32 4294901760, %v1479_v21  ;;  %v582_v55 = vand.u32 4294901760, %v581_v28 }
  0x7b   : > { %v1485_v22 = vsub.f32 %v3412_v14, %v4575_v20  ;;  %v1497_v19 = vsub.f32 %v3414_v15, %v4586_v31  ;;  %v594_v38 = vand.u32 4294901760, %v593_v59  ;;  %v4579_v18 = vand.u32 4294901760, %v3424_v36 }
  0x7c   : > { %2584 = vmatpush1.bf16.msra.mxu0 %v2583_v1  ;;  %v587_v46 = vsub.f32 %v3422_v35, %v4578_v10  ;;  %v4583_v16 = vand.u32 4294901760, %v3431_v45  ;;  %v2775_v21 = vpack.c.bf16 %v1480_v39, %v1468_v13  ;;  %v4580_v30 = vand.u32 4294901760, %v3433_v50 }
  0x7d   : > { %v1486_v28 = vand.u32 4294901760, %v1485_v22  ;;  %v1498_v24 = vand.u32 4294901760, %v1497_v19  ;;  %v2585_v20 = vpack.c.bf16 %v594_v38, %v582_v55  ;;  %v599_v1 = vsub.f32 %v3424_v36, %v4579_v18 }
  0x7e   : > { %v588_v43 = vand.u32 4294901760, %v587_v46  ;;  %v1491_v59 = vsub.f32 %v3431_v45, %v4583_v16  ;;  %2776 = vmatpush1.bf16.msra.mxu1 %v2775_v21  ;;  %v1503_v13 = vsub.f32 %v3433_v50, %v4580_v30  ;;  %v4581_v22 = vand.u32 4294901760, %v3437_v54 }
  0x7f   : > { %v2777_v10 = vpack.c.bf16 %v1498_v24, %v1486_v28  ;;  %v4582_v19 = vand.u32 4294901760, %v3444_v58  ;;  %2586 = vmatprep.subr.bf16.mxu0 %v2585_v20  ;;  %v600_v55 = vand.u32 4294901760, %v599_v1  ;;  %v4584_v38 = vand.u32 4294901760, %v3448_v60 }
  0x80   : > { %v1492_v39 = vand.u32 4294901760, %v1491_v59  ;;  %v4585_v46 = vand.u32 4294901760, %v3451_v2  ;;  %v1504_v18 = vand.u32 4294901760, %v1503_v13  ;;  %v605_v24 = vsub.f32 %v3437_v54, %v4581_v22 }
  0x81   : > { %2778 = vmatprep.subr.bf16.mxu1 %v2777_v10  ;;  %v617_v21 = vsub.f32 %v3444_v58, %v4582_v19  ;;  %v4589_v28 = vand.u32 4294901760, %v3455_v9  ;;  %v2587_v30 = vpack.c.bf16 %v600_v55, %v588_v43  ;;  %v1509_v20 = vsub.f32 %v3448_v60, %v4584_v38 }
  0x82   : > { %v1521_v10 = vsub.f32 %v3451_v2, %v4585_v46  ;;  %v4588_v1 = vand.u32 4294901760, %v3462_v11  ;;  %v2779_v59 = vpack.c.bf16 %v1504_v18, %v1492_v39  ;;  %v606_v13 = vand.u32 4294901760, %v605_v24 }
  0x83   : > { %v618_v22 = vand.u32 4294901760, %v617_v21  ;;  %v611_v19 = vsub.f32 %v3455_v9, %v4589_v28  ;;  %2588 = vmatpush1.bf16.msra.mxu0 %v2587_v30  ;;  %v1510_v16 = vand.u32 4294901760, %v1509_v20  ;;  %v4587_v38 = vand.u32 4294901760, %v3466_v52 }
  0x84   : > { %v1522_v43 = vand.u32 4294901760, %v1521_v10  ;;  %v623_v55 = vsub.f32 %v3462_v11, %v4588_v1  ;;  %2780 = vmatpush1.bf16.msra.mxu1 %v2779_v59  ;;  %v4592_v18 = vand.u32 4294901760, %v3471_v33  ;;  %v4593_v39 = vand.u32 4294901760, %v3475_v7 }
  0x85   : > { %v2589_v46 = vpack.c.bf16 %v618_v22, %v606_v13  ;;  %v612_v31 = vand.u32 4294901760, %v611_v19  ;;  %v1515_v30 = vsub.f32 %v3466_v52, %v4587_v38  ;;  %v4594_v20 = vand.u32 4294901760, %v3477_v5  ;;  %v4743_v19 = vld [vmem:[#allocation38_spill] sm:$0xff]  ;;  %v4744_v13 = vld [vmem:[#allocation40_spill] sm:$0xff] }
  0x86   : > { %v2781_v24 = vpack.c.bf16 %v1522_v43, %v1510_v16  ;;  %v624_v21 = vand.u32 4294901760, %v623_v55  ;;  %v1527_v10 = vsub.f32 %v3471_v33, %v4592_v18  ;;  %v629_v22 = vsub.f32 %v3475_v7, %v4593_v39  ;;  %v4748_v33 = vld [vmem:[#allocation46_spill] sm:$0xff] }
  0x87   : > { %2590 = vmatprep.subr.bf16.mxu0 %v2589_v46  ;;  %v4603_v59 = vand.u32 4294901760, %v4743_v19  ;;  %v4606_v16 = vand.u32 4294901760, %v4744_v13  ;;  %v1516_v55 = vand.u32 4294901760, %v1515_v30  ;;  %v641_v38 = vsub.f32 %v3477_v5, %v4594_v20  ;;  %v4745_v46 = vld [vmem:[#allocation42_spill] sm:$0xff]  ;;  %v4747_v20 = vld [vmem:[#allocation45_spill] sm:$0xff] }
  0x88   : > { %2782 = vmatprep.subr.bf16.mxu1 %v2781_v24  ;;  %v2591_v43 = vpack.c.bf16 %v624_v21, %v612_v31  ;;  %v4605_v1 = vand.u32 4294901760, %v4745_v46  ;;  %v1528_v28 = vand.u32 4294901760, %v1527_v10  ;;  %v630_v52 = vand.u32 4294901760, %v629_v22  ;;  %v4746_v21 = vld [vmem:[#allocation43_spill] sm:$0xff] }
  0x89   : > { %v1533_v18 = vsub.f32 %v4743_v19, %v4603_v59  ;;  %v1545_v39 = vsub.f32 %v4744_v13, %v4606_v16  ;;  %v642_v24 = vand.u32 4294901760, %v641_v38  ;;  %v4608_v30 = vand.u32 4294901760, %v4746_v21 }
  0x8a   : > { %2592 = vmatpush1.bf16.msra.mxu0 %v2591_v43  ;;  %v635_v31 = vsub.f32 %v4745_v46, %v4605_v1  ;;  %v4611_v5 = vand.u32 4294901760, %v4747_v20  ;;  %v2783_v10 = vpack.c.bf16 %v1528_v28, %v1516_v55  ;;  %v4610_v11 = vand.u32 4294901760, %v4748_v33  ;;  %v4750_v55 = vld [vmem:[#allocation49_spill] sm:$0xff] }
  0x8b   : > { %v1534_v22 = vand.u32 4294901760, %v1533_v18  ;;  %v1546_v7 = vand.u32 4294901760, %v1545_v39  ;;  %v2593_v59 = vpack.c.bf16 %v642_v24, %v630_v52  ;;  %v647_v43 = vsub.f32 %v4746_v21, %v4608_v30  ;;  %v4749_v18 = vld [vmem:[#allocation48_spill] sm:$0xff] }
  0x8c   : > { %v636_v19 = vand.u32 4294901760, %v635_v31  ;;  %v1539_v38 = vsub.f32 %v4747_v20, %v4611_v5  ;;  %2784 = vmatpush1.bf16.msra.mxu1 %v2783_v10  ;;  %v1551_v28 = vsub.f32 %v4748_v33, %v4610_v11  ;;  %v4613_v39 = vand.u32 4294901760, %v4749_v18  ;;  %v4751_v31 = vld [vmem:[#allocation50_spill] sm:$0xff] }
  0x8d   : > { %v2785_v1 = vpack.c.bf16 %v1546_v7, %v1534_v22  ;;  %v4614_v16 = vand.u32 4294901760, %v4750_v55  ;;  %2594 = vmatprep.subr.bf16.mxu0 %v2593_v59  ;;  %v648_v52 = vand.u32 4294901760, %v647_v43  ;;  %v4616_v46 = vand.u32 4294901760, %v4751_v31  ;;  %v4752_v22 = vld [vmem:[#allocation54_spill] sm:$0xff]  ;;  %v4753_v43 = vld [vmem:[#allocation55_spill] sm:$0xff] }
  0x8e   : > { %v1540_v24 = vand.u32 4294901760, %v1539_v38  ;;  %v4618_v30 = vand.u32 4294901760, %v3524_v57  ;;  %v1552_v21 = vand.u32 4294901760, %v1551_v28  ;;  %v653_v7 = vsub.f32 %v4749_v18, %v4613_v39  ;;  %v4755_v18 = vld [vmem:[#allocation58_spill] sm:$0xff] }
  0x8f   : > { %2786 = vmatprep.subr.bf16.mxu1 %v2785_v1  ;;  %v665_v10 = vsub.f32 %v4750_v55, %v4614_v16  ;;  %v4625_v11 = vand.u32 4294901760, %v4752_v22  ;;  %v2595_v5 = vpack.c.bf16 %v648_v52, %v636_v19  ;;  %v1557_v59 = vsub.f32 %v4751_v31, %v4616_v46  ;;  %v4754_v46 = vld [vmem:[#allocation57_spill] sm:$0xff] }
  0x90   : > { %v1569_v1 = vsub.f32 %v3524_v57, %v4618_v30  ;;  %v4623_v38 = vand.u32 4294901760, %v4753_v43  ;;  %v2787_v28 = vpack.c.bf16 %v1552_v21, %v1540_v24  ;;  %v654_v33 = vand.u32 4294901760, %v653_v7  ;;  %v4756_v24 = vld [vmem:[#allocation60_spill] sm:$0xff] }
  0x91   : > { %v666_v39 = vand.u32 4294901760, %v665_v10  ;;  %v659_v16 = vsub.f32 %v4752_v22, %v4625_v11  ;;  %2596 = vmatpush1.bf16.msra.mxu0 %v2595_v5  ;;  %v1558_v55 = vand.u32 4294901760, %v1557_v59  ;;  %v4624_v31 = vand.u32 4294901760, %v4754_v46  ;;  %v4757_v59 = vld [vmem:[#allocation61_spill] sm:$0xff] }
  0x92   : > { %v1570_v19 = vand.u32 4294901760, %v1569_v1  ;;  %v671_v52 = vsub.f32 %v4753_v43, %v4623_v38  ;;  %2788 = vmatpush1.bf16.msra.mxu1 %v2787_v28  ;;  %v4626_v21 = vand.u32 4294901760, %v4755_v18  ;;  %v4627_v7 = vand.u32 4294901760, %v4756_v24 }
  0x93   : > { %v2597_v30 = vpack.c.bf16 %v666_v39, %v654_v33  ;;  %v660_v57 = vand.u32 4294901760, %v659_v16  ;;  %v1563_v5 = vsub.f32 %v4754_v46, %v4624_v31  ;;  %v4628_v1 = vand.u32 4294901760, %v4757_v59  ;;  %v4758_v16 = vld [vmem:[#allocation62_spill] sm:$0xff] }
  0x94   : > { %v2789_v10 = vpack.c.bf16 %v1570_v19, %v1558_v55  ;;  %v672_v20 = vand.u32 4294901760, %v671_v52  ;;  %v1575_v38 = vsub.f32 %v4755_v18, %v4626_v21  ;;  %v677_v33 = vsub.f32 %v4756_v24, %v4627_v7 }
  0x95   : > { %2598 = vmatprep.subr.bf16.mxu0 %v2597_v30  ;;  %v4630_v39 = vand.u32 4294901760, %v4758_v16  ;;  %v4637_v55 = vand.u32 4294901760, %v3560_v23  ;;  %v1564_v19 = vand.u32 4294901760, %v1563_v5  ;;  %v689_v52 = vsub.f32 %v4757_v59, %v4628_v1 }
  0x96   : > { %2790 = vmatprep.subr.bf16.mxu1 %v2789_v10  ;;  %v2599_v28 = vpack.c.bf16 %v672_v20, %v660_v57  ;;  %v4632_v30 = vand.u32 4294901760, %v3564_v48  ;;  %v1576_v31 = vand.u32 4294901760, %v1575_v38  ;;  %v678_v11 = vand.u32 4294901760, %v677_v33 }
  0x97   : > { %v1581_v21 = vsub.f32 %v4758_v16, %v4630_v39  ;;  %v1593_v7 = vsub.f32 %v3560_v23, %v4637_v55  ;;  %v690_v10 = vand.u32 4294901760, %v689_v52  ;;  %v4634_v20 = vand.u32 4294901760, %v3569_v61 }
  0x98   : > { %2600 = vmatpush1.bf16.msra.mxu0 %v2599_v28  ;;  %v683_v57 = vsub.f32 %v3564_v48, %v4632_v30  ;;  %v4633_v5 = vand.u32 4294901760, %v3573_v44  ;;  %v2791_v38 = vpack.c.bf16 %v1576_v31, %v1564_v19  ;;  %v4635_v59 = vand.u32 4294901760, %v3575_v3  ;;  %v346_v30 = vld [vmem:[%s4457_s0 + $0x8] sm:$0xff] }
  0x99   : > { %v1582_v33 = vand.u32 4294901760, %v1581_v21  ;;  %v1594_v1 = vand.u32 4294901760, %v1593_v7  ;;  %v2601_v39 = vpack.c.bf16 %v690_v10, %v678_v11  ;;  %v695_v28 = vsub.f32 %v3569_v61, %v4634_v20 }
  0x9a   : > { %v684_v16 = vand.u32 4294901760, %v683_v57  ;;  %v1587_v52 = vsub.f32 %v3573_v44, %v4633_v5  ;;  %2792 = vmatpush1.bf16.msra.mxu1 %v2791_v38  ;;  %v1599_v21 = vsub.f32 %v3575_v3, %v4635_v59  ;;  %v4636_v11 = vand.u32 4294901760, %v3582_v29 }
  0x9b   : > { %v2793_v31 = vpack.c.bf16 %v1594_v1, %v1582_v33  ;;  %v4638_v7 = vand.u32 4294901760, %v3584_v37  ;;  %2602 = vmatprep.subr.bf16.mxu0 %v2601_v39  ;;  %v696_v19 = vand.u32 4294901760, %v695_v28  ;;  %v4641_v57 = vand.u32 4294901760, %v3588_v0 }
  0x9c   : > { %v1588_v10 = vand.u32 4294901760, %v1587_v52  ;;  %v4642_v5 = vand.u32 4294901760, %v3594_v32  ;;  %v1600_v20 = vand.u32 4294901760, %v1599_v21  ;;  %v701_v1 = vsub.f32 %v3582_v29, %v4636_v11 }
  0x9d   : > { %2794 = vmatprep.subr.bf16.mxu1 %v2793_v31  ;;  %v713_v38 = vsub.f32 %v3584_v37, %v4638_v7  ;;  %v3861_v33 = vand.u32 4294901760, %v346_v30  ;;  %v2603_v59 = vpack.c.bf16 %v696_v19, %v684_v16  ;;  %v1605_v39 = vsub.f32 %v3588_v0, %v4641_v57 }
  0x9e   : > { %v1617_v28 = vsub.f32 %v3594_v32, %v4642_v5  ;;  %v4644_v52 = vand.u32 4294901760, %v3598_v34  ;;  %v2795_v31 = vpack.c.bf16 %v1600_v20, %v1588_v10  ;;  %v702_v21 = vand.u32 4294901760, %v701_v1 }
  0x9f   : > { %4759 = vst [vmem:[#allocation40_spill] sm:$0xff] %v3861_v33  ;;  %v714_v11 = vand.u32 4294901760, %v713_v38  ;;  %v3871_v55 = vsub.f32 %v346_v30, %v3861_v33  ;;  %2604 = vmatpush1.bf16.msra.mxu0 %v2603_v59  ;;  %v1606_v7 = vand.u32 4294901760, %v1605_v39  ;;  %v4643_v19 = vand.u32 4294901760, %v3603_v56 }
  0xa0   : > { %v1618_v37 = vand.u32 4294901760, %v1617_v28  ;;  %v707_v16 = vsub.f32 %v3598_v34, %v4644_v52  ;;  %2796 = vmatpush1.bf16.msra.mxu1 %v2795_v31  ;;  %v4650_v20 = vand.u32 4294901760, %v3607_v27  ;;  %v4649_v10 = vand.u32 4294901760, %v3609_v4  ;;  %v4764_v52 = vld [vmem:[#allocation13_spill] sm:$0xff] }
  0xa1   : > { %4760 = vst [vmem:[#allocation54_spill] sm:$0xff] %v3871_v55  ;;  %v2605_v57 = vpack.c.bf16 %v714_v11, %v702_v21  ;;  %v3878_v5 = vand.u32 4294901760, %v3871_v55  ;;  %v719_v59 = vsub.f32 %v3603_v56, %v4643_v19  ;;  %v4762_v21 = vld [vmem:[#allocation10_spill] sm:$0xff]  ;;  %v4763_v19 = vld [vmem:[#allocation11_spill] sm:$0xff]  ;;  %v4778_v56 = vand.u32 4294901760, %v3389_v62 }
  0xa2   : > { %v2797_v30 = vpack.c.bf16 %v1618_v37, %v1606_v7  ;;  %v708_v1 = vand.u32 4294901760, %v707_v16  ;;  %v1611_v11 = vsub.f32 %v3607_v27, %v4650_v20  ;;  %v1623_v39 = vsub.f32 %v3609_v4, %v4649_v10  ;;  %v4765_v10 = vld [vmem:[#allocation16_spill] sm:$0xff] }
  0xa3   : > { %4761 = vst [vmem:[#allocation55_spill] sm:$0xff] %v3878_v5  ;;  %2606 = vmatprep.subr.bf16.mxu0 %v2605_v57  ;;  %v522_v38 = vsub.f32 %v3871_v55, %v3878_v5  ;;  %v720_v28 = vand.u32 4294901760, %v719_v59  ;;  %v2609_v16 = vpack.c.bf16 %v4762_v21, %v3332_v17  ;;  %v2801_v5 = vpack.c.bf16 %v4764_v52, %v4763_v19 }
  0xa4   : > { %2798 = vmatprep.subr.bf16.mxu1 %v2797_v30  ;;  %v1612_v7 = vand.u32 4294901760, %v1611_v11  ;;  %v1624_v31 = vand.u32 4294901760, %v1623_v39  ;;  %v2611_v30 = vpack.c.bf16 %v4765_v10, %v3347_v26  ;;  %v2803_v59 = vpack.c.bf16 %v3362_v41, %v3360_v40  ;;  %v4766_v11 = vld [vmem:[#allocation75_spill] sm:$0xff]  ;;  %v4771_v41 = vld [vmem:[#allocation37_spill] sm:$0xff]  ;;  %v4772_v10 = vld [vmem:[#allocation38_spill] sm:$0xff] }
  0xa5   : > { %v523_v37 = vand.u32 4294901760, %v522_v38  ;;  %v2607_v57 = vpack.c.bf16 %v720_v28, %v708_v1  ;;  %v2613_v1 = vpack.c.bf16 %v3371_v47, %v3364_v42  ;;  %v2805_v38 = vpack.c.bf16 %v3379_v51, %v3375_v49 }
  0xa6   : > { %v2799_v55 = vpack.c.bf16 %v1624_v31, %v1612_v7  ;;  %v2807_v39 = vpack.c.bf16 %v3398_v6, %v3391_v63  ;;  %v2617_v28 = vpack.c.bf16 %v3408_v12, %v3402_v8  ;;  %v2811_v7 = vpack.c.bf16 %v3433_v50, %v3431_v45 }
  0xa7   : > { %524 = vmatmul.mubr.f32.gmra.mrb[2].mxu0 %v523_v37  ;;  %1428 = vmatmul.mubr.f32.gmra.mrb[2].mxu1 %v523_v37  ;;  %v2619_v37 = vpack.c.bf16 %v3424_v36, %v3422_v35  ;;  %v2621_v31 = vpack.c.bf16 %v3444_v58, %v3437_v54  ;;  %v4773_v26 = vand.u32 4294901760, %v3364_v42  ;;  %v4774_v52 = vand.u32 4294901760, %v3371_v47 }
  0xa8   : > { %2608 = vmatpush1.bf16.msra.mxu0 %v2607_v57  ;;  %754 = vmatprep.mubr.f32.mxu0 %v4742_v25  ;;  %v4767_v57 = vld [vmem:[#allocation31_spill] sm:$0xff]  ;;  %v4775_v21 = vand.u32 4294901760, %v3375_v49  ;;  %v4776_v17 = vand.u32 4294901760, %v3379_v51  ;;  %v4777_v27 = vand.u32 4294901760, %v3381_v53  ;;  %v4779_v42 = vand.u32 4294901760, %v3391_v63 }
  0xa9   : > { %2800 = vmatpush1.bf16.msra.mxu1 %v2799_v55  ;;  %2610 = vmatprep.subr.bf16.mxu0 %v2609_v16  ;;  %v2615_v55 = vpack.c.bf16 %v3389_v62, %v3381_v53  ;;  %v2813_v16 = vpack.c.bf16 %v3451_v2, %v3448_v60  ;;  %v3941_v19 = vpack.c.bf16 %v4774_v52, %v4773_v26  ;;  %v4780_v47 = vand.u32 4294901760, %v3398_v6 }
  0xaa   : > { %1658 = vmatprep.mubr.f32.mxu1 %v4742_v25  ;;  %2802 = vmatprep.subr.bf16.mxu1 %v2801_v5  ;;  %v2809_v5 = vpack.c.bf16 %v3414_v15, %v3412_v14  ;;  %v3947_v4 = vpack.c.bf16 %v4776_v17, %v4775_v21  ;;  %v3953_v34 = vpack.c.bf16 %v4778_v56, %v4777_v27  ;;  %v4781_v49 = vand.u32 4294901760, %v3402_v8 }
  0xab   : > { %756 = vmatmul.mubr.f32.vlgmr.msra.gmra.mrb[0].mxu0 %v4766_v11  ;;  %v3959_v26 = vpack.c.bf16 %v4780_v47, %v4779_v42  ;;  %v4782_v51 = vand.u32 4294901760, %v3408_v12  ;;  %v4783_v53 = vand.u32 4294901760, %v3412_v14  ;;  %v4784_v62 = vand.u32 4294901760, %v3414_v15  ;;  %v4801_v47 = vld [vmem:[#allocation42_spill] sm:$0xff] }
  0xac   : > { %2612 = vmatpush1.bf16.msra.mxu0 %v2611_v30  ;;  %1660 = vmatmul.mubr.f32.vlgmr.msra.gmra.mrb[0].mxu1 %v4766_v11  ;;  %v2623_v30 = vpack.c.bf16 %v4767_v57, %v3455_v9  ;;  %v4770_v11 = vld [vmem:[#allocation36_spill] sm:$0xff]  ;;  %v4785_v63 = vand.u32 4294901760, %v3422_v35  ;;  %v4786_v6 = vand.u32 4294901760, %v3424_v36  ;;  %v4787_v8 = vand.u32 4294901760, %v3431_v45 }
  0xad   : > { %2804 = vmatpush1.bf16.msra.mxu1 %v2803_v59  ;;  %2614 = vmatprep.subr.bf16.mxu0 %v2613_v1  ;;  %v4768_v59 = vld [vmem:[#allocation33_spill] sm:$0xff]  ;;  %v4769_v1 = vld [vmem:[#allocation34_spill] sm:$0xff]  ;;  %v2625_v40 = vpack.c.bf16 %v4771_v41, %v4770_v11  ;;  %v3965_v17 = vpack.c.bf16 %v4782_v51, %v4781_v49  ;;  %v3971_v27 = vpack.c.bf16 %v4784_v62, %v4783_v53  ;;  %v4788_v12 = vand.u32 4294901760, %v3433_v50 }
  0xae   : > { %2806 = vmatprep.subr.bf16.mxu1 %v2805_v38  ;;  %761 = vmatprep.mubr.f32.mxu0 %v4742_v25  ;;  %v2815_v20 = vpack.c.bf16 %v4769_v1, %v4768_v59  ;;  %v2817_v38 = vpack.c.bf16 %v4744_v13, %v4772_v10  ;;  %v3978_v56 = vpack.c.bf16 %v4786_v6, %v4785_v63  ;;  %v4789_v14 = vand.u32 4294901760, %v3437_v54  ;;  %v4805_v53 = vld [vmem:[#allocation45_spill] sm:$0xff]  ;;  %v4809_v6 = vld [vmem:[#allocation48_spill] sm:$0xff] }
  0xaf   : > { %1665 = vmatprep.mubr.f32.mxu1 %v4742_v25  ;;  %763 = vmatmul.mubr.f32.gmra.mrb[2].mxu0 %v3861_v33  ;;  %v3984_v52 = vpack.c.bf16 %v4788_v12, %v4787_v8  ;;  %v4790_v15 = vand.u32 4294901760, %v3444_v58  ;;  %v4791_v35 = vand.u32 4294901760, %v3448_v60  ;;  %v4792_v36 = vand.u32 4294901760, %v3451_v2  ;;  %v4811_v8 = vld [vmem:[#allocation49_spill] sm:$0xff] }
  0xb0   : > { %2616 = vmatpush1.bf16.msra.mxu0 %v2615_v55  ;;  %1667 = vmatmul.mubr.f32.gmra.mrb[2].mxu1 %v3861_v33  ;;  %v4793_v45 = vand.u32 4294901760, %v3455_v9  ;;  %v4794_v50 = vand.u32 4294901760, %v4767_v57  ;;  %v4795_v54 = vand.u32 4294901760, %v4768_v59  ;;  %v4796_v58 = vand.u32 4294901760, %v4769_v1  ;;  %v4803_v59 = vld [vmem:[#allocation43_spill] sm:$0xff] }
  0xb1   : > { %2808 = vmatpush1.bf16.msra.mxu1 %v2807_v39  ;;  %2618 = vmatprep.subr.bf16.mxu0 %v2617_v28  ;;  %v3990_v21 = vpack.c.bf16 %v4790_v15, %v4789_v14  ;;  %v3997_v55 = vpack.c.bf16 %v4792_v36, %v4791_v35  ;;  %v4798_v60 = vand.u32 4294901760, %v4771_v41  ;;  %v4799_v2 = vand.u32 4294901760, %v4772_v10  ;;  %v4815_v15 = vld [vmem:[#allocation52_spill] sm:$0xff] }
  0xb2   : > { %2810 = vmatprep.subr.bf16.mxu1 %v2809_v5  ;;  %897 = vmatprep.mubr.f32.mxu0 %v4742_v25  ;;  %v4003_v39 = vpack.c.bf16 %v4794_v50, %v4793_v45  ;;  %v4009_v28 = vpack.c.bf16 %v4796_v58, %v4795_v54  ;;  %v4797_v5 = vand.u32 4294901760, %v4770_v11  ;;  %v4800_v9 = vand.u32 4294901760, %v4744_v13  ;;  %v4807_v11 = vld [vmem:[#allocation46_spill] sm:$0xff] }
  0xb3   : > { %1801 = vmatprep.mubr.f32.mxu1 %v4742_v25  ;;  %v4802_v49 = vand.u32 4294901760, %v4801_v47  ;;  %v4804_v51 = vand.u32 4294901760, %v4803_v59  ;;  %v4806_v62 = vand.u32 4294901760, %v4805_v53  ;;  %v4808_v63 = vand.u32 4294901760, %v4807_v11  ;;  %v4813_v13 = vld [vmem:[#allocation50_spill] sm:$0xff] }
  0xb4   : > { %v4015_v42 = vpack.c.bf16 %v4798_v60, %v4797_v5  ;;  %2620 = vmatpush1.bf16.msra.mxu0 %v2619_v37  ;;  %v4021_v57 = vpack.c.bf16 %v4800_v9, %v4799_v2  ;;  %v4810_v37 = vand.u32 4294901760, %v4809_v6  ;;  %v4812_v10 = vand.u32 4294901760, %v4811_v8  ;;  %v4824_v2 = vld [vmem:[#allocation61_spill] sm:$0xff] }
  0xb5   : > { %v4027_v1 = vpack.c.bf16 %v4804_v51, %v4802_v49  ;;  %v4033_v41 = vpack.c.bf16 %v4808_v63, %v4806_v62  ;;  %2812 = vmatpush1.bf16.msra.mxu1 %v2811_v7  ;;  %2622 = vmatprep.subr.bf16.mxu0 %v2621_v31  ;;  %v4814_v14 = vand.u32 4294901760, %v4813_v13  ;;  %v4816_v35 = vand.u32 4294901760, %v4815_v15  ;;  %v2219_v7 = vld [vmem:[%s4459_s2] sm:$0xff]  ;;  %v4827_v51 = vld [vmem:[#allocation62_spill] sm:$0xff] }
  0xb6   : > { %v4039_v12 = vpack.c.bf16 %v4812_v10, %v4810_v37  ;;  %v4817_v45 = vand.u32 4294901760, %v4752_v22  ;;  %v4818_v50 = vand.u32 4294901760, %v4753_v43  ;;  %v4820_v58 = vand.u32 4294901760, %v4754_v46  ;;  %2814 = vmatprep.subr.bf16.mxu1 %v2813_v16 }
  0xb7   : > { %v4045_v36 = vpack.c.bf16 %v4816_v35, %v4814_v14  ;;  %v4821_v5 = vand.u32 4294901760, %v4755_v18  ;;  %v4823_v31 = vand.u32 4294901760, %v4756_v24  ;;  %v4825_v9 = vand.u32 4294901760, %v4824_v2 }
  0xb8   : > { %v4051_v54 = vpack.c.bf16 %v4818_v50, %v4817_v45  ;;  %v4828_v62 = vand.u32 4294901760, %v4827_v51  ;;  %v4829_v63 = vand.u32 4294901760, %v3560_v23  ;;  %v4831_v10 = vand.u32 4294901760, %v3564_v48  ;;  %2624 = vmatpush1.bf16.msra.mxu0 %v2623_v30  ;;  %v2220_v30 = vld [vmem:[%s4459_s2 + $0x8] sm:$0xff] }
  0xb9   : > { %v4057_v60 = vpack.c.bf16 %v4821_v5, %v4820_v58  ;;  %v4066_v49 = vpack.c.bf16 %v4825_v9, %v4823_v31  ;;  %v4832_v14 = vand.u32 4294901760, %v3569_v61  ;;  %v4834_v16 = vand.u32 4294901760, %v3573_v44  ;;  %v4838_v5 = vld [vmem:[#allocation67_spill] sm:$0xff]  ;;  %2816 = vmatpush1.bf16.msra.mxu1 %v2815_v20  ;;  %2626 = vmatprep.subr.bf16.mxu0 %v2625_v40  ;;  %v2281_v20 = vld [vmem:[%s4461_s4 + $0x8] sm:$0xff] }
  0xba   : > { %4819 = vst [vmem:[#allocation57_spill] sm:$0xff] %v4051_v54  ;;  %v4072_v37 = vpack.c.bf16 %v4829_v63, %v4828_v62  ;;  %v4835_v45 = vand.u32 4294901760, %v3575_v3  ;;  %v4837_v58 = vand.u32 4294901760, %v3582_v29  ;;  %v4839_v31 = vand.u32 4294901760, %v4838_v5  ;;  %2818 = vmatprep.subr.bf16.mxu1 %v2817_v38 }
  0xbb   : > { %4822 = vst [vmem:[#allocation58_spill] sm:$0xff] %v4057_v60  ;;  %4826 = vst [vmem:[#allocation60_spill] sm:$0xff] %v4066_v49  ;;  %v4078_v35 = vpack.c.bf16 %v4832_v14, %v4831_v10  ;;  %v4840_v62 = vand.u32 4294901760, %v3588_v0  ;;  %v4841_v63 = vand.u32 4294901760, %v3594_v32  ;;  %v4842_v10 = vld [vmem:[#allocation70_spill] sm:$0xff]  ;;  %v2631_v40 = vpack.c.bf16 %v4753_v43, %v4752_v22 }
  0xbc   : > { %4830 = vst [vmem:[#allocation31_spill] sm:$0xff] %v4072_v37  ;;  %v4084_v50 = vpack.c.bf16 %v4835_v45, %v4834_v16  ;;  %v4090_v9 = vpack.c.bf16 %v4839_v31, %v4837_v58  ;;  %v4843_v14 = vand.u32 4294901760, %v4842_v10  ;;  %v4846_v16 = vld [vmem:[#allocation73_spill] sm:$0xff]  ;;  %v3164_v58 = vmov 0  }
  0xbd   : > { %4833 = vst [vmem:[#allocation33_spill] sm:$0xff] %v4078_v35  ;;  %v4096_v33 = vpack.c.bf16 %v4841_v63, %v4840_v62  ;;  %v4844_v35 = vld [vmem:[#allocation71_spill] sm:$0xff]  ;;  %v4847_v45 = vand.u32 4294901760, %v4846_v16  ;;  %3039 = vset.pattern.permute.xlu0 %v3164_v58  ;;  %v2627_v31 = vpack.c.bf16 %v4803_v59, %v4801_v47  ;;  %v2280_v62 = vld [vmem:[%s4461_s4] sm:$0xff]  ;;  %v2821_v47 = vpack.c.bf16 %v4815_v15, %v4813_v13  ;;  %v4861_v15 = vld [vmem:[#allocation25_spill] sm:$0xff] }
  0xbe   : > { %4836 = vst [vmem:[#allocation34_spill] sm:$0xff] %v4084_v50  ;;  %v4845_v37 = vand.u32 4294901760, %v4844_v35  ;;  %v4848_v50 = vld [vmem:[#allocation74_spill] sm:$0xff]  ;;  %2223 = vperm.xlu0 %3039, %v2219_v7   ;;  %3040 = vset.pattern.permute.xlu1 %v3164_v58  ;;  %v2823_v59 = vpack.c.bf16 %v4755_v18, %v4754_v46  ;;  %v2633_v38 = vpack.c.bf16 %v4824_v2, %v4756_v24  ;;  %v4856_v24 = vld [vmem:[#allocation21_spill] sm:$0xff]  ;;  %v4860_v13 = vld [vmem:[#allocation24_spill] sm:$0xff] }
  0xbf   : > { %v4849_v60 = vand.u32 4294901760, %v4848_v50  ;;  %2283 = vperm.xlu1 %3040, %v2280_v62   ;;  %2628 = vmatpush1.bf16.msra.mxu0 %v2627_v31  ;;  %v2635_v22 = vpack.c.bf16 %v3569_v61, %v3564_v48  ;;  %v2827_v43 = vpack.c.bf16 %v3575_v3, %v3573_v44  ;;  %v2637_v46 = vpack.c.bf16 %v4838_v5, %v3582_v29  ;;  %v4850_v3 = vld [vmem:[#allocation8_spill] sm:$0xff]  ;;  %v4853_v29 = vld [vmem:[#allocation14_spill] sm:$0xff]  ;;  %v4863_v2 = vld [vmem:[#allocation27_spill] sm:$0xff] }
  0xc0   : > { %v4102_v49 = vpack.c.bf16 %v4845_v37, %v4843_v14  ;;  %v2819_v37 = vpack.c.bf16 %v4807_v11, %v4805_v53  ;;  %v2825_v53 = vpack.c.bf16 %v3560_v23, %v4827_v51  ;;  %v2829_v18 = vpack.c.bf16 %v3594_v32, %v3588_v0  ;;  %v4851_v48 = vld [vmem:[#allocation12_spill] sm:$0xff]  ;;  %v4854_v0 = vld [vmem:[#allocation17_spill] sm:$0xff]  ;;  %v4857_v11 = vld [vmem:[#allocation54_spill] sm:$0xff] }
  0xc1   : > { %v4108_v54 = vpack.c.bf16 %v4849_v60, %v4847_v45  ;;  %v2629_v60 = vpack.c.bf16 %v4811_v8, %v4809_v6  ;;  %v2639_v23 = vpack.c.bf16 %v4844_v35, %v4842_v10  ;;  %v2831_v61 = vpack.c.bf16 %v4848_v50, %v4846_v16  ;;  %v4852_v44 = vld [vmem:[#allocation76_spill] sm:$0xff]  ;;  %v4858_v6 = vld [vmem:[#allocation22_spill] sm:$0xff]  ;;  %v4859_v8 = vld [vmem:[#allocation23_spill] sm:$0xff] }
  0xc2   : > { %2228 = vperm.xlu0 %3039, %v2220_v30   ;;  %2820 = vmatpush1.bf16.msra.mxu1 %v2819_v37  ;;  %v4855_v32 = vld [vmem:[#allocation20_spill] sm:$0xff]  ;;  %v4862_v7 = vld [vmem:[#allocation26_spill] sm:$0xff]  ;;  %v4865_v35 = vld [vmem:[#allocation29_spill] sm:$0xff] }
  0xc3   : > { %2630 = vmatprep.subr.bf16.mxu0 %v2629_v60  ;;  %2822 = vmatprep.subr.bf16.mxu1 %v2821_v47  ;;  %v4864_v51 = vld [vmem:[#allocation28_spill] sm:$0xff]  ;;  %v4866_v50 = vld [vmem:[#allocation30_spill] sm:$0xff]  ;;  %v4868_v63 = vld [vmem:[#allocation35_spill] sm:$0xff] }
  0xc4   : > { %2286 = vperm.xlu1 %3040, %v2281_v20   ;;  %2632 = vmatpush1.bf16.msra.mxu0 %v2631_v40  ;;  %v4867_v5 = vld [vmem:[#allocation32_spill] sm:$0xff]  ;;  %v4869_v10 = vld [vmem:[#allocation39_spill] sm:$0xff]  ;;  %v4870_v14 = vld [vmem:[#allocation41_spill] sm:$0xff] }
  0xc5   : > { %2634 = vmatprep.subr.bf16.mxu0 %v2633_v38  ;;  %v4871_v16 = vld [vmem:[#allocation44_spill] sm:$0xff]  ;;  %v4872_v45 = vld [vmem:[#allocation47_spill] sm:$0xff]  ;;  %v4874_v31 = vld [vmem:[#allocation53_spill] sm:$0xff] }
  0xc6   : > { %2824 = vmatpush1.bf16.msra.mxu1 %v2823_v59  ;;  %v4873_v58 = vld [vmem:[#allocation51_spill] sm:$0xff]  ;;  %v4875_v62 = vld [vmem:[#allocation56_spill] sm:$0xff]  ;;  %v4879_v47 = vld [vmem:[#allocation65_spill] sm:$0xff] }
  0xc7   : > { %2826 = vmatprep.subr.bf16.mxu1 %v2825_v53  ;;  %v4876_v37 = vld [vmem:[#allocation59_spill] sm:$0xff]  ;;  %v4878_v30 = vld [vmem:[#allocation64_spill] sm:$0xff]  ;;  %v4880_v40 = vld [vmem:[#allocation66_spill] sm:$0xff] }
  0xc8   : > { %2636 = vmatpush1.bf16.msra.mxu0 %v2635_v22  ;;  %v4877_v60 = vld [vmem:[#allocation63_spill] sm:$0xff]  ;;  %v4881_v20 = vld [vmem:[#allocation9_spill] sm:$0xff]  ;;  %v4883_v38 = vld [vmem:[#allocation10_spill] sm:$0xff] }
  0xc9   : > { %2638 = vmatprep.subr.bf16.mxu0 %v2637_v46  ;;  %v4882_v59 = vand.u32 4294901760, %v4881_v20  ;;  %v4884_v53 = vand.u32 4294901760, %v4883_v38  ;;  %v4886_v46 = vld [vmem:[#allocation11_spill] sm:$0xff]  ;;  %v4896_v20 = vld [vmem:[#allocation18_spill] sm:$0xff] }
  0xca   : > { %2828 = vmatpush1.bf16.msra.mxu1 %v2827_v43  ;;  %v4885_v43 = vld [vmem:[#allocation68_spill] sm:$0xff]  ;;  %v4897_v38 = vand.u32 4294901760, %v4896_v20 }
  0xcb   : > { %2830 = vmatprep.subr.bf16.mxu1 %v2829_v18  ;;  %v2673_v22 = vpack.c.bf16 %v4884_v53, %v4882_v59  ;;  %v4887_v18 = vand.u32 4294901760, %v4886_v46  ;;  %v4898_v59 = vld [vmem:[#allocation19_spill] sm:$0xff]  ;;  %v4900_v46 = vld [vmem:[#allocation77_spill] sm:$0xff] }
  0xcc   : > { %2640 = vmatpush1.bf16.msra.mxu0 %v2639_v23  ;;  %v4888_v23 = vld [vmem:[#allocation13_spill] sm:$0xff]  ;;  %v4899_v53 = vand.u32 4294901760, %v4898_v59 }
  0xcd   : > { %2642 = vmatprep.subr.bf16.mxu0 %v4850_v3 }
  0xce   : > { %2832 = vmatpush1.bf16.msra.mxu1 %v2831_v61  ;;  %v4889_v61 = vand.u32 4294901760, %v4888_v23 }
  0xcf   : > { %2834 = vmatprep.subr.bf16.mxu1 %v4851_v48  ;;  %900 = vmatmul.mubr.f32.vlgmr.msra.gmra.mrb[0].mxu0 %v4852_v44 }
  0xd0   : > { %2644 = vmatpush1.bf16.msra.mxu0 %v4853_v29  ;;  %905 = vmatprep.mubr.f32.mxu0 %v4742_v25 }
  0xd1   : > { %1804 = vmatmul.mubr.f32.vlgmr.msra.gmra.mrb[0].mxu1 %v4852_v44  ;;  %2646 = vmatprep.subr.bf16.mxu0 %v4855_v32  ;;  %v2865_v44 = vpack.c.bf16 %v4889_v61, %v4887_v18 }
  0xd2   : > { %2836 = vmatpush1.bf16.msra.mxu1 %v4854_v0  ;;  %1809 = vmatprep.mubr.f32.mxu1 %v4742_v25 }
  0xd3   : > { %2838 = vmatprep.subr.bf16.mxu1 %v4856_v24  ;;  %908 = vmatmul.mubr.f32.gmra.mrb[2].mxu0 %v4857_v11 }
  0xd4   : > { %2648 = vmatpush1.bf16.msra.mxu0 %v4858_v6  ;;  %1010 = vmatprep.mubr.f32.mxu0 %v4742_v25 }
  0xd5   : > { %1812 = vmatmul.mubr.f32.gmra.mrb[2].mxu1 %v4857_v11  ;;  %2650 = vmatprep.subr.bf16.mxu0 %v4860_v13  ;;  %v4890_v11 = vld [vmem:[#allocation69_spill] sm:$0xff] }
  0xd6   : > { %2840 = vmatpush1.bf16.msra.mxu1 %v4859_v8  ;;  %1914 = vmatprep.mubr.f32.mxu1 %v4742_v25 }
  0xd7   : > { %2842 = vmatprep.subr.bf16.mxu1 %v4861_v15 }
  0xd8   : > { %2652 = vmatpush1.bf16.msra.mxu0 %v4862_v7 }
  0xd9   : > { %2654 = vmatprep.subr.bf16.mxu0 %v4864_v51 }
  0xda   : > { %2844 = vmatpush1.bf16.msra.mxu1 %v4863_v2 }
  0xdb   : > { %2846 = vmatprep.subr.bf16.mxu1 %v4865_v35 }
  0xdc   : > { %2656 = vmatpush1.bf16.msra.mxu0 %v4866_v50 }
  0xdd   : > { %2658 = vmatprep.subr.bf16.mxu0 %v4868_v63 }
  0xde   : > { %2848 = vmatpush1.bf16.msra.mxu1 %v4867_v5 }
  0xdf   : > { %2850 = vmatprep.subr.bf16.mxu1 %v4869_v10 }
  0xe0   : > { %2660 = vmatpush1.bf16.msra.mxu0 %v4870_v14 }
  0xe1   : > { %2662 = vmatprep.subr.bf16.mxu0 %v4872_v45 }
  0xe2   : > { %2852 = vmatpush1.bf16.msra.mxu1 %v4871_v16 }
  0xe3   : > { %2854 = vmatprep.subr.bf16.mxu1 %v4873_v58 }
  0xe4   : > { %2664 = vmatpush1.bf16.msra.mxu0 %v4874_v31 }
  0xe5   : > { %2666 = vmatprep.subr.bf16.mxu0 %v4876_v37  ;;  %v4893_v37 = vld [vmem:[#allocation16_spill] sm:$0xff] }
  0xe6   : > { %2856 = vmatpush1.bf16.msra.mxu1 %v4875_v62 }
  0xe7   : > { %2858 = vmatprep.subr.bf16.mxu1 %v4877_v60  ;;  %v4891_v60 = vld [vmem:[#allocation15_spill] sm:$0xff] }
  0xe8   : > { %2668 = vmatpush1.bf16.msra.mxu0 %v4878_v30  ;;  %v4892_v30 = vand.u32 4294901760, %v4891_v60 }
  0xe9   : > { %2670 = vmatprep.subr.bf16.mxu0 %v4880_v40  ;;  %v4895_v40 = vld [vmem:[#allocation72_spill] sm:$0xff] }
  0xea   : > { %2860 = vmatpush1.bf16.msra.mxu1 %v4879_v47  ;;  %v4894_v47 = vand.u32 4294901760, %v4893_v37  ;;  %v4901_v37 = vld [vmem:[#allocation55_spill] sm:$0xff] }
  0xeb   : > { %2862 = vmatprep.subr.bf16.mxu1 %v4885_v43  ;;  %v2867_v43 = vpack.c.bf16 %v4899_v53, %v4897_v38 }
  0xec   : > { %2672 = vmatpush1.bf16.msra.mxu0 %v4890_v11  ;;  %v2675_v62 = vpack.c.bf16 %v4894_v47, %v4892_v30 }
  0xed   : > { %2674 = vmatprep.subr.bf16.mxu0 %v2673_v22 }
  0xee   : > { %2864 = vmatpush1.bf16.msra.mxu1 %v4895_v40 }
  0xef   : > { %2866 = vmatprep.subr.bf16.mxu1 %v2865_v44  ;;  %1014 = vmatmul.mubr.f32.vlgmr.msra.gmra.mrb[0].mxu0 %v4900_v46 }
  0xf0   : > { %2676 = vmatpush1.bf16.msra.mxu0 %v2675_v62  ;;  %1019 = vmatprep.mubr.f32.mxu0 %v4742_v25 }
  0xf1   : > { %1918 = vmatmul.mubr.f32.vlgmr.msra.gmra.mrb[0].mxu1 %v4900_v46  ;;  %2678 = vmatprep.subr.bf16.mxu0 %v3941_v19  ;;  %v4904_v19 = vld [vmem:[#allocation60_spill] sm:$0xff] }
  0xf2   : > { %2868 = vmatpush1.bf16.msra.mxu1 %v2867_v43  ;;  %1923 = vmatprep.mubr.f32.mxu1 %v4742_v25 }
  0xf3   : > { %2870 = vmatprep.subr.bf16.mxu1 %v3947_v4  ;;  %1023 = vmatmul.mubr.f32.gmra.mrb[2].mxu0 %v4901_v37  ;;  %v4902_v4 = vld [vmem:[#allocation57_spill] sm:$0xff] }
  0xf4   : > { %2680 = vmatpush1.bf16.msra.mxu0 %v3953_v34  ;;  %1189 = vmatprep.mubr.f32.mxu0 %v4742_v25  ;;  %v4903_v34 = vld [vmem:[#allocation58_spill] sm:$0xff] }
  0xf5   : > { %1927 = vmatmul.mubr.f32.gmra.mrb[2].mxu1 %v4901_v37  ;;  %2682 = vmatprep.subr.bf16.mxu0 %v3965_v17  ;;  %v4906_v17 = vld [vmem:[#allocation33_spill] sm:$0xff] }
  0xf6   : > { %2872 = vmatpush1.bf16.msra.mxu1 %v3959_v26  ;;  %2093 = vmatprep.mubr.f32.mxu1 %v4742_v25  ;;  %v4905_v26 = vld [vmem:[#allocation31_spill] sm:$0xff] }
  0xf7   : > { %2874 = vmatprep.subr.bf16.mxu1 %v3971_v27  ;;  %v4907_v27 = vld [vmem:[#allocation34_spill] sm:$0xff] }
  0xf8   : > { %2684 = vmatpush1.bf16.msra.mxu0 %v3978_v56  ;;  %v4908_v56 = vld [vmem:[#allocation75_spill] sm:$0xff] }
  0xf9   : > { %2686 = vmatprep.subr.bf16.mxu0 %v3990_v21  ;;  %v4911_v21 = vld [vmem:[#allocation59_spill] sm:$0xff] }
  0xfa   : > { %2876 = vmatpush1.bf16.msra.mxu1 %v3984_v52  ;;  %v4910_v52 = vld [vmem:[#allocation56_spill] sm:$0xff] }
  0xfb   : > { %2878 = vmatprep.subr.bf16.mxu1 %v3997_v55  ;;  %v4912_v55 = vld [vmem:[#allocation63_spill] sm:$0xff] }
  0xfc   : > { %2688 = vmatpush1.bf16.msra.mxu0 %v4003_v39  ;;  %v4913_v39 = vld [vmem:[#allocation64_spill] sm:$0xff] }
  0xfd   : > { %2690 = vmatprep.subr.bf16.mxu0 %v4015_v42  ;;  %v4915_v42 = vld [vmem:[#allocation66_spill] sm:$0xff] }
  0xfe   : > { %2880 = vmatpush1.bf16.msra.mxu1 %v4009_v28  ;;  %v4914_v28 = vld [vmem:[#allocation65_spill] sm:$0xff] }
  0xff   : > { %2882 = vmatprep.subr.bf16.mxu1 %v4021_v57  ;;  %v4916_v57 = vld [vmem:[#allocation68_spill] sm:$0xff] }
 0x100   : > { %2692 = vmatpush1.bf16.msra.mxu0 %v4027_v1  ;;  %v2241_v1 = vlaneseq }
 0x101   : > { %2694 = vmatprep.subr.bf16.mxu0 %v4039_v12 }
 0x102   : > { %2884 = vmatpush1.bf16.msra.mxu1 %v4033_v41  ;;  %v2242_v41 = vshrl.u32 %v2241_v1, 7  ;;  %v2271_v12 = vand.u32 127, %v2241_v1 }
 0x103   : > { %2886 = vmatprep.subr.bf16.mxu1 %v4045_v36 }
 0x104   : > { %2696 = vmatpush1.bf16.msra.mxu0 %v4902_v4  ;;  %v2243_v36 = vsub.s32 0, %v2242_v41 }
 0x105   : > { %2698 = vmatprep.subr.bf16.mxu0 %v4904_v19 }
 0x106   : > { %2888 = vmatpush1.bf16.msra.mxu1 %v4903_v34 }
 0x107   : > { %2890 = vmatprep.subr.bf16.mxu1 %v4905_v26 }
 0x108   : > { %2700 = vmatpush1.bf16.msra.mxu0 %v4906_v17 }
 0x109   : > { %2702 = vmatprep.subr.bf16.mxu0 %v4090_v9  ;;  %v2251_v9 = vsub.s32 2, %v2242_v41 }
 0x10a   : > { %2892 = vmatpush1.bf16.msra.mxu1 %v4907_v27 }
 0x10b   : > { %2894 = vmatprep.subr.bf16.mxu1 %v4096_v33  ;;  %v4909_v33 = vld [vmem:[#allocation40_spill] sm:$0xff] }
 0x10c   : > { %2704 = vmatpush1.bf16.msra.mxu0 %v4102_v49  ;;  %v2272_v49 = vadd.s32 128, %v2271_v12 }
 0x10d   : > { %2706 = vmatprep.subr.bf16.mxu0 %v4850_v3  ;;  %v2247_v3 = vsub.s32 1, %v2242_v41 }
 0x10e   : > { %2896 = vmatpush1.bf16.msra.mxu1 %v4108_v54  ;;  %v2275_v54 = vstv %s2535_s9 }
 0x10f   : > { %2898 = vmatprep.subr.bf16.mxu1 %v4851_v48  ;;  %1191 = vmatmul.mubr.f32.vlgmr.msra.gmra.mrb[0].mxu0 %v4908_v56 }
 0x110   : > { %2708 = vmatpush1.bf16.msra.mxu0 %v4853_v29  ;;  %1196 = vmatprep.mubr.f32.mxu0 %v4742_v25  ;;  %v2273_v29 = vadd.s32 256, %v2271_v12 }
 0x111   : > { %2095 = vmatmul.mubr.f32.vlgmr.msra.gmra.mrb[0].mxu1 %v4908_v56  ;;  %2710 = vmatprep.subr.bf16.mxu0 %v4855_v32  ;;  %v4294_v32 = vadd.s32 %v2275_v54, %v2271_v12 }
 0x112   : > { %2900 = vmatpush1.bf16.msra.mxu1 %v4854_v0  ;;  %2100 = vmatprep.mubr.f32.mxu1 %v4742_v25 }
 0x113   : > { %2902 = vmatprep.subr.bf16.mxu1 %v4856_v24  ;;  %1198 = vmatmul.mubr.f32.gmra.mrb[2].mxu0 %v4909_v33  ;;  %v2255_v24 = vsub.s32 3, %v2242_v41 }
 0x114   : > { %2712 = vmatpush1.bf16.msra.mxu0 %v4858_v6  ;;  %1300 = vmatprep.mubr.f32.mxu0 %v4742_v25 }
 0x115   : > { %2102 = vmatmul.mubr.f32.gmra.mrb[2].mxu1 %v4909_v33  ;;  %2714 = vmatprep.subr.bf16.mxu0 %v4860_v13  ;;  %v2274_v13 = vadd.s32 384, %v2271_v12 }
 0x116   : > { %2904 = vmatpush1.bf16.msra.mxu1 %v4859_v8  ;;  %2204 = vmatprep.mubr.f32.mxu1 %v4742_v25  ;;  %v4296_v8 = vadd.s32 %v2275_v54, %v2272_v49 }
 0x117   : > { %2906 = vmatprep.subr.bf16.mxu1 %v4861_v15  ;;  %v4306_v62 = vadd.s32 %v2275_v54, %v2274_v13 }
 0x118   : > { %2716 = vmatpush1.bf16.msra.mxu0 %v4862_v7 }
 0x119   : > { %2718 = vmatprep.subr.bf16.mxu0 %v4864_v51 }
 0x11a   : > { %2908 = vmatpush1.bf16.msra.mxu1 %v4863_v2 }
 0x11b   : > { %2910 = vmatprep.subr.bf16.mxu1 %v4865_v35 }
 0x11c   : > { %2720 = vmatpush1.bf16.msra.mxu0 %v4866_v50 }
 0x11d   : > { %2722 = vmatprep.subr.bf16.mxu0 %v4868_v63 }
 0x11e   : > { %2912 = vmatpush1.bf16.msra.mxu1 %v4867_v5  ;;  %v4298_v5 = vadd.s32 %v2275_v54, %v2273_v29 }
 0x11f   : > { %2914 = vmatprep.subr.bf16.mxu1 %v4869_v10 }
 0x120   : > { %2724 = vmatpush1.bf16.msra.mxu0 %v4870_v14 }
 0x121   : > { %2726 = vmatprep.subr.bf16.mxu0 %v4872_v45 }
 0x122   : > { %2916 = vmatpush1.bf16.msra.mxu1 %v4871_v16 }
 0x123   : > { %2918 = vmatprep.subr.bf16.mxu1 %v4873_v58 }
 0x124   : > { %2728 = vmatpush1.bf16.msra.mxu0 %v4874_v31 }
 0x125   : > { %2730 = vmatprep.subr.bf16.mxu0 %v4911_v21 }
 0x126   : > { %2920 = vmatpush1.bf16.msra.mxu1 %v4910_v52 }
 0x127   : > { %2922 = vmatprep.subr.bf16.mxu1 %v4912_v55 }
 0x128   : > { %2732 = vmatpush1.bf16.msra.mxu0 %v4913_v39 }
 0x129   : > { %2734 = vmatprep.subr.bf16.mxu0 %v4915_v42 }
 0x12a   : > { %2924 = vmatpush1.bf16.msra.mxu1 %v4914_v28 }
 0x12b   : > { %2926 = vmatprep.subr.bf16.mxu1 %v4916_v57 }
 0x12c   : > { %2736 = vmatpush1.bf16.msra.mxu0 %v4890_v11 }
 0x12e   : > { %2928 = vmatpush1.bf16.msra.mxu1 %v4895_v40 }
 0x12f   : > { %1302 = vmatmul.mubr.f32.vlgmr.msra.gmra.mrb[0].mxu0 %v4908_v56 }
 0x130   : > { %1307 = vmatprep.mubr.f32.mxu0 %v4742_v25 }
 0x131   : > { %2206 = vmatmul.mubr.f32.vlgmr.msra.gmra.mrb[0].mxu1 %v4908_v56 }
 0x132   : > { %2211 = vmatprep.mubr.f32.mxu1 %v4742_v25  ;;  %v2239_v25 = vld [vmem:[%s335_s16] sm:$0xf] }
 0x133   : > { %1309 = vmatmul.mubr.f32.gmra.mrb[2].mxu0 %v4909_v33  ;;  %v2244_v6 = vrot.slane %v2239_v25, %v2243_v36  ;;  %v2252_v7 = vrot.slane %v2239_v25, %v2251_v9  ;;  %v2248_v2 = vrot.slane %v2239_v25, %v2247_v3  ;;  %v2256_v16 = vrot.slane %v2239_v25, %v2255_v24 }
 0x135   : > { %2213 = vmatmul.mubr.f32.gmra.mrb[2].mxu1 %v4909_v33 }
 0x13d   : > { %v2224_v48 = vpop.permute.xlu0 %2223 }
 0x13e   : > { %v4292_v0 = vpop.permute.xlu1 %2283 }
 0x13f   : > { %vm2288_vm0 = vcmp.eq.s32.totalorder %v4294_v32, %v4292_v0  ;;  %vm2289_vm1 = vcmp.eq.s32.totalorder %v4296_v8, %v4292_v0  ;;  %vm2290_vm2 = vcmp.eq.s32.totalorder %v4298_v5, %v4292_v0  ;;  %vm2291_vm3 = vcmp.eq.s32.totalorder %v4306_v62, %v4292_v0 }
 0x141   : > { %v2229_v58 = vpop.permute.xlu0 %2228 }
 0x143   : > { %v4312_v47 = vpop.permute.xlu1 %2286 }
 0x144   : > { %vm2292_vm4 = vcmp.eq.s32.totalorder %v4294_v32, %v4312_v47  ;;  %vm2293_vm5 = vcmp.eq.s32.totalorder %v4296_v8, %v4312_v47  ;;  %vm2294_vm6 = vcmp.eq.s32.totalorder %v4298_v5, %v4312_v47  ;;  %vm2295_vm7 = vcmp.eq.s32.totalorder %v4306_v62, %v4312_v47 }
 0x202   : > { %v1303_v15 = vpop.f32.mrb[0].mxu0 }
 0x203   : > { %v2231_v51 = vmul.f32 %v2224_v48, %v1303_v15  ;;  %v1305_v50 = vpop.f32.mrb[1].mxu0 }
 0x204   : > { %v2207_v35 = vpop.f32.mrb[0].mxu1  ;;  %v2232_v10 = vmul.f32 %v2224_v48, %v1305_v50 }
 0x205   : > { %v2233_v63 = vmul.f32 %v2224_v48, %v2207_v35  ;;  %v2209_v14 = vpop.f32.mrb[1].mxu1  ;;  %v4302_v45 = vmul.f32 %v2244_v6, %v2231_v51 }
 0x206   : > { %v2234_v31 = vmul.f32 %v2224_v48, %v2209_v14  ;;  %v4310_v30 = vmul.f32 %v2248_v2, %v2232_v10  ;;  %v1310_v40 = vpop.f32.mrb[2].mxu0 }
 0x207   : > { %v4308_v60 = vmul.f32 %v2252_v7, %v2233_v63  ;;  %v2296_v22 = vsel %vm2288_vm0, %v4302_v45, 0.0  ;;  %v2235_v43 = vmul.f32 %v2229_v58, %v1310_v40  ;;  %v1312_v23 = vpop.f32.mrb[3].mxu0 }
 0x208   : > { %v2214_v18 = vpop.f32.mrb[2].mxu1  ;;  %v2297_v61 = vsel %vm2289_vm1, %v4310_v30, 0.0  ;;  %v4324_v44 = vmul.f32 %v2256_v16, %v2234_v31  ;;  %v2236_v20 = vmul.f32 %v2229_v58, %v1312_v23 }
 0x209   : > { %v2237_v11 = vmul.f32 %v2229_v58, %v2214_v18  ;;  %v2216_v38 = vpop.f32.mrb[3].mxu1  ;;  %v4326_v59 = vmul.f32 %v2244_v6, %v2235_v43  ;;  %v2304_v46 = vadd.f32 %v2297_v61, %v2296_v22  ;;  %v2298_v34 = vsel %vm2290_vm2, %v4308_v60, 0.0 }
 0x20a   : > { %v2238_v53 = vmul.f32 %v2229_v58, %v2216_v38  ;;  %v4334_v4 = vmul.f32 %v2248_v2, %v2236_v20  ;;  %v2299_v56 = vsel %vm2291_vm3, %v4324_v44, 0.0 }
 0x20b   : > { %v4332_v37 = vmul.f32 %v2252_v7, %v2237_v11  ;;  %v2300_v19 = vsel %vm2292_vm4, %v4326_v59, 0.0  ;;  %v2305_v26 = vadd.f32 %v2304_v46, %v2298_v34 }
 0x20c   : > { %v2301_v17 = vsel %vm2293_vm5, %v4334_v4, 0.0  ;;  %v4350_v27 = vmul.f32 %v2256_v16, %v2238_v53 }
 0x20d   : > { %v2306_v33 = vadd.f32 %v2305_v26, %v2299_v56  ;;  %v2309_v52 = vadd.f32 %v2301_v17, %v2300_v19  ;;  %v2302_v21 = vsel %vm2294_vm6, %v4332_v37, 0.0 }
 0x20e   : > { %v2303_v39 = vsel %vm2295_vm7, %v4350_v27, 0.0 }
 0x20f   : > { %2307 = vadd.xlane.f32.xlu0 %v2306_v33  ;;  %v2310_v55 = vadd.f32 %v2309_v52, %v2302_v21 }
 0x211   : > { %v2311_v28 = vadd.f32 %v2310_v55, %v2303_v39 }
 0x213   : > { %2312 = vadd.xlane.f32.xlu1 %v2311_v28 }
 0x29c   : > { %v2308_v42 = vpop.xlane.xlu0 %2307 }
 0x29d   : > { %v2314_v57 = vmul.f32 0.033333335, %v2308_v42 }
 0x29f   : > { %v2316_v1 = vmul.f32 %v2314_v57, %v2314_v57  ;;  %v2336_v15 = vmul.f32 0.87758255, %v2314_v57  ;;  %v2536_v35 = vadd.f32 -0.23971277, %v2314_v57  ;;  %vm2342_vm11 = vcmp.gt.f32.partialorder %v2314_v57, -0.87758255 }
 0x2a0   : > { %v2313_v41 = vpop.xlane.xlu1 %2312 }
 0x2a1   : > { %v2318_v12 = vsub.f32 1.0, %v2316_v1  ;;  %v2315_v36 = vmul.f32 0.033333335, %v2313_v41 }
 0x2a3   : > { %v2320_v54 = vmax.f32 %v2318_v12, 0.0  ;;  %v2317_v49 = vmul.f32 %v2315_v36, %v2315_v36  ;;  %v2337_v31 = vmul.f32 0.87758255, %v2315_v36  ;;  %v2537_v23 = vadd.f32 -0.23971277, %v2315_v36 }
 0x2a4   : > { %vm2343_vm13 = vcmp.gt.f32.partialorder %v2315_v36, -0.87758255 }
 0x2a5   : > { %3041 = vrsqrt.f32 %v2320_v54  ;;  %v2319_v25 = vsub.f32 1.0, %v2317_v49  ;;  %vm2324_vm8 = vcmp.eq.f32.partialorder %v2320_v54, inf  ;;  %v2327_v29 = vand.u32 2147483648, %v2320_v54 }
 0x2a6   : > { %vm2326_vm9 = vcmp.eq.f32.partialorder %v2320_v54, 0.0 }
 0x2a7   : > { %v2321_v9 = vmax.f32 %v2319_v25, 0.0 }
 0x2a9   : > { %3043 = vrsqrt.f32 %v2321_v9  ;;  %vm2331_vm10 = vcmp.eq.f32.partialorder %v2321_v9, inf  ;;  %v2334_v50 = vand.u32 2147483648, %v2321_v9  ;;  %vm2333_vm12 = vcmp.eq.f32.partialorder %v2321_v9, 0.0 }
 0x2af   : > { %v3042_v3 = vpop.eup %3041 }
 0x2b0   : > { %v2323_v48 = vmul.f32 %v3042_v3, %v2320_v54 }
 0x2b2   : > { %v2325_v24 = vsel %vm2324_vm8, %v2320_v54, %v2323_v48 }
 0x2b3   : > { %v2328_v6 = vsel %vm2326_vm9, %v2327_v29, %v2325_v24  ;;  %v3044_v13 = vpop.eup %3043 }
 0x2b4   : > { %v2338_v7 = vmul.f32 0.47942555, %v2328_v6  ;;  %v2330_v2 = vmul.f32 %v3044_v13, %v2321_v9 }
 0x2b6   : > { %v2340_v51 = vsub.f32 %v2336_v15, %v2338_v7  ;;  %v2332_v63 = vsel %vm2331_vm10, %v2321_v9, %v2330_v2 }
 0x2b7   : > { %v2335_v14 = vsel %vm2333_vm12, %v2334_v50, %v2332_v63 }
 0x2b8   : > { %v2346_v10 = vsel %vm2342_vm11, %v2340_v51, %v2536_v35  ;;  %v2339_v58 = vmul.f32 0.47942555, %v2335_v14 }
 0x2b9   : > { %v2348_v16 = vmul.f32 30.0, %v2346_v10 }
 0x2bb   : > { %v2350_v40 = vsel %vm2288_vm0, %v2348_v16, %v4302_v45  ;;  %v2351_v22 = vsel %vm2289_vm1, %v2348_v16, %v4310_v30  ;;  %v2352_v43 = vsel %vm2290_vm2, %v2348_v16, %v4308_v60  ;;  %v2353_v18 = vsel %vm2291_vm3, %v2348_v16, %v4324_v44 }
 0x2bc   : > { %2358 = vst [vmem:[%s318_s24] sm:$0xff] %v2350_v40  ;;  %2359 = vst [vmem:[%s318_s24 + $0x8] sm:$0xff] %v2351_v22  ;;  %v2341_v45 = vsub.f32 %v2337_v31, %v2339_v58 }
 0x2bd   : > { %2360 = vst [vmem:[%s318_s24 + $0x10] sm:$0xff] %v2352_v43  ;;  %2361 = vst [vmem:[%s318_s24 + $0x18] sm:$0xff] %v2353_v18 }
 0x2be   : > { %v2347_v60 = vsel %vm2343_vm13, %v2341_v45, %v2537_v23 }
 0x2bf   : > { %v2349_v0 = vmul.f32 30.0, %v2347_v60 }
 0x2c1   : > { %v2354_v30 = vsel %vm2292_vm4, %v2349_v0, %v4326_v59  ;;  %v2355_v61 = vsel %vm2293_vm5, %v2349_v0, %v4334_v4  ;;  %v2356_v44 = vsel %vm2294_vm6, %v2349_v0, %v4332_v37  ;;  %v2357_v11 = vsel %vm2295_vm7, %v2349_v0, %v4350_v27 }
 0x2c2   : > { %2362 = vst [vmem:[%s318_s24 + $0x20] sm:$0xff] %v2354_v30  ;;  %2363 = vst [vmem:[%s318_s24 + $0x28] sm:$0xff] %v2355_v61 }
 0x2c3   : > { %2364 = vst [vmem:[%s318_s24 + $0x30] sm:$0xff] %v2356_v44  ;;  %2365 = vst [vmem:[%s318_s24 + $0x38] sm:$0xff] %v2357_v11 }
 0x2c4   : > { %3088 = shalt.err (!%p3085_p4)
}
 0x2c5   : > { %s3089_s9 = scalar_lea.hbm %s4390_s25, 1024  ;;  %s3093_s16 = scalar_lea.hbm %s4462_s5, 2048 }
 0x2c6   : > { %p3090_p6 = scmp.ne.s32.totalorder %s4390_s25, %s3089_s9  ;;  %p3094_p2 = scmp.lt.u32.totalorder %s4390_s25, %s4462_s5 }
 0x2c7   : > { %p3095_p5 = scmp.lt.u32.totalorder %s3093_s16, %s3089_s9  ;;  %p3097_p9 = scmp.lt.u32.totalorder %s3089_s9, %s4390_s25 }
 0x2c8   : > { %p3091_p7 = pnand %p3090_p6, %p4917_p11 }
 0x2c9   : > { %p3096_p8 = por %p3095_p5, %p3094_p2 }
 0x2ca   : > { %p3092_p12 = pneg %p3091_p7 }
 0x2cb   : > { %p3098_p0 = por %p3097_p9, %p3096_p8 }
 0x2cd   : > { %p3099_p10 = pnand %p3098_p0, %p3092_p12 }
 0x2cf   : > { %3102 = shalt.err (!%p3099_p10)
}
 0x2d0   : > { %s3166_s13 = smov 512   ;;  %s3167_s15 = smov 1024  }
 0x2d1   : > { %s3168_s27 = smov 32  }
 0x2d2   : > { %2971 = dma.vmem_to_hbm [thread:$0]  (%p4917_p11), %s4392_s12, 1024, %s4390_s25, %s2367_s21, %s3166_s13, %s3167_s15, %s3168_s27  }
 0x2d3 PF: > { %s2398_s29 = sand.u32 1, %s3137_s18   ;;  %p4918_p13 = scmp.ne.s32.totalorder %s4669_s8, 0 }
 0x2d4   : > { %p4919_p1 = scmp.ge.s32.totalorder %s3157_s23, 2  ;;  %s2399_s10 = scalar_lea.sflag [#allocation4], %s2398_s29 }
 0x2d6   : > { %p2978_p3 = pnand %p4919_p1, %p4918_p13 }
 0x2d8   : > { %3132 = dma.done.wait (!%p2978_p3), %s2399_s10, 1024  }
 0x2d9   : > { %3134 = vsyncadd (!%p2978_p3), %s2399_s10, 4294966272  ;;  %s21_s23 = sadd.s32 1, %s3157_s23   ;;  %s4920_s18 = smov %s3141_s19 }
 0x2da   : > { %p18_p4 = scmp.ge.s32.totalorder %s21_s23, 4   ;;  %s4921_s19 = smov %s3145_s20 }
 0x2db   : > { %s4922_s20 = smov %s3255_s7  ;;  %s4923_s21 = smov %s3153_s22 }
 0x2dc   : > { %s4924_s22 = smov %s4926_s26  ;;  %20 = sbr.rel (!%p18_p4) target bundleno = 6 (0x6), region = 97 }
 0x2e3   :  { %2404 = vsyncpa [#allocation3], 1 }
 0x2e4   :  { %2406 = vsyncpa [#allocation3 + $0x1], 1 }
 0x2e5   :  { %2407 = vsyncpa [#allocation4], 1 }
 0x2e6   :  { %2409 = vsyncpa [#allocation4 + $0x1], 1 }

</bundles_post_ra>
